<compile_context>
chip_gen: v5e
topology: v5e:2x2
jax: 0.10.0
libtpu: 0.0.40
codegen_flags: <defaults>
</compile_context>

<pallas_src>
import jax
import jax.numpy as jnp
from jax.experimental import pallas as pl
from jax.experimental.pallas import tpu as pltpu


def fused_subsample_conv_kernel(x_ref, w_ref, ph_ref, pw_ref, o_ref, xs_ref):
    # x_ref : (1, C, H, W)   raw input image (no wrapper-side subsample)
    # w_ref : (Cout, C+1)    folded conv1∘conv2 weight with bias as last column
    # ph_ref: (Ho, H)        0/1 even-row selector   Ph[r, h] = (h == 2r)
    # pw_ref: (W, Wo)        0/1 even-col selector   Pw[w, v] = (w == 2v)
    # o_ref : (1, Cout, P)   lane-dense output, P = Ho*Wo
    # xs_ref: (C+1, P)       VMEM scratch: subsampled, flattened activations
    C = x_ref.shape[1]
    Ho = ph_ref.shape[0]
    Wo = pw_ref.shape[1]
    P = Ho * Wo

    ph = ph_ref[...]
    pw = pw_ref[...]
    x = x_ref[0]                                   # (C, H, W)

    # Per-channel stride-2 subsample via two small selection matmuls (MXU),
    # avoiding strided loads and value relayouts entirely.
    planes = [
        jnp.dot(ph,
                jnp.dot(x[c], pw, preferred_element_type=jnp.float32),
                preferred_element_type=jnp.float32)          # (Ho, Wo)
        for c in range(C)
    ]

    # Assemble the (C+1, P) activation matrix in VMEM scratch with pixels on
    # lanes: row-block stores at static lane offsets perform the
    # (Ho, Wo) -> P flatten; the extra all-ones row folds the bias into the
    # final matmul (the 8th sublane is free padding for Cin=7 anyway).
    xs_ref[C:C + 1, :] = jnp.ones((1, P), jnp.float32)
    for r in range(Ho):                            # static unroll, Ho <= 32 here
        blk = jnp.concatenate([p[r:r + 1, :] for p in planes], axis=0)  # (C, Wo)
        xs_ref[:C, r * Wo:(r + 1) * Wo] = blk

    # Single fused matmul: folded conv1∘conv2 weights (+bias column) applied
    # to every output pixel of this image; lane-dense store.
    y = jnp.dot(w_ref[...], xs_ref[...], preferred_element_type=jnp.float32)
    o_ref[0] = y.astype(o_ref.dtype)


def init_params(key, dtype=jnp.float32):
    """Deterministic init matching the PyTorch layer shapes.
    conv1: Conv2d(7, 16, 1, stride=2)  -> w1 (7, 16), b1 (1, 16)
    conv2: Conv2d(16, 64, 1)           -> w2 (16, 64), b2 (1, 64)
    (PyTorch-style uniform(-1/sqrt(fan_in), 1/sqrt(fan_in)).)"""
    k1, k2, k3, k4 = jax.random.split(key, 4)
    bound1 = 1.0 / jnp.sqrt(7.0)
    bound2 = 1.0 / jnp.sqrt(16.0)
    w1 = jax.random.uniform(k1, (7, 16), dtype, -bound1, bound1)
    b1 = jax.random.uniform(k2, (1, 16), dtype, -bound1, bound1)
    w2 = jax.random.uniform(k3, (16, 64), dtype, -bound2, bound2)
    b2 = jax.random.uniform(k4, (1, 64), dtype, -bound2, bound2)
    return w1, b1, w2, b2


def fold_params(params):
    """conv2(conv1(x)) has no intervening nonlinearity -> one affine map.
    NOTE: any future nonlinearity between conv1 and conv2 invalidates this."""
    w1, b1, w2, b2 = params
    w = (w1 @ w2).T                                  # (64, 7)
    b = (b1 @ w2 + b2).T                             # (64, 1)
    return jnp.concatenate([w, b], axis=1)           # (64, 8) = [W | bias]


def model_forward(data, other1=None, other2=None, *, params):
    """data: NCHW (N, 7, H, W).  other1/other2 only feed the ill-typed
    testcase='0' branch and do not affect the valid output."""
    # TODO(synk): the testcase='0' branch (conv3..conv6 + v5 + x6) is ill-typed
    # in PyTorch (Conv2d(8,8,1) applied to a 64-channel tensor), so it has no
    # valid semantics and is not implemented.
    w8 = fold_params(params).astype(data.dtype)      # (Cout, C+1)
    N, C, H, W = data.shape
    Cout = w8.shape[0]
    Ho, Wo = (H + 1) // 2, (W + 1) // 2              # 1x1 conv, stride 2
    P = Ho * Wo

    # 0/1 selection matrices implementing the stride-2 subsample on the MXU.
    ph = (jnp.arange(H)[None, :] == 2 * jnp.arange(Ho)[:, None]).astype(data.dtype)
    pw = (jnp.arange(W)[:, None] == 2 * jnp.arange(Wo)[None, :]).astype(data.dtype)

    out = pl.pallas_call(
        fused_subsample_conv_kernel,
        out_shape=jax.ShapeDtypeStruct((N, Cout, P), data.dtype),
        grid_spec=pltpu.PrefetchScalarGridSpec(
            num_scalar_prefetch=0,
            grid=(N,),                               # one step per image
            in_specs=[
                pl.BlockSpec((1, C, H, W), lambda n: (n, 0, 0, 0)),
                pl.BlockSpec((Cout, C + 1), lambda n: (0, 0)),   # resident
                pl.BlockSpec((Ho, H), lambda n: (0, 0)),         # resident
                pl.BlockSpec((W, Wo), lambda n: (0, 0)),         # resident
            ],
            out_specs=pl.BlockSpec((1, Cout, P), lambda n: (n, 0, 0)),
            scratch_shapes=[pltpu.VMEM((C + 1, P), jnp.float32)],
        ),
        compiler_params=pltpu.CompilerParams(
            dimension_semantics=("parallel",)),       # batch across TCs on v7x
    )(data, w8, ph, pw)

    return out.reshape(N, Cout, Ho, Wo)               # free row-major reshape


def reference_forward(data, params):
    """Pure-JAX reference of conv2(conv1(data)) with the unfolded params."""
    w1, b1, w2, b2 = params
    xs = data[:, :, ::2, ::2]
    h = jnp.einsum('nchw,ck->nkhw', xs, w1) + b1.reshape(1, -1, 1, 1)
    y = jnp.einsum('nchw,ck->nkhw', h, w2) + b2.reshape(1, -1, 1, 1)
    return y


if __name__ == "__main__":
    key = jax.random.PRNGKey(0)
    kd, k1, k2, kp, kd2 = jax.random.split(key, 5)

    params = init_params(kp)

    # Shapes from the module spec: data (2, 7, 64, 64) -> output (2, 64, 32, 32)
    data = jax.random.normal(kd, (2, 7, 64, 64), jnp.float32)
    other1 = jax.random.normal(k1, (2, 2, 16, 16), jnp.float32)   # unused (broken branch)
    other2 = jax.random.normal(k2, (2, 1, 16, 16), jnp.float32)   # unused (broken branch)

    out = jax.block_until_ready(model_forward(data, other1, other2, params=params))
    ref = reference_forward(data, params)
    assert out.shape == (2, 64, 32, 32), out.shape
    assert jnp.allclose(out, ref, atol=1e-4, rtol=1e-3), "mismatch vs JAX reference"

    # Ragged case: 60x60 -> 30x30, P = 900 (not a lane multiple) -- handled
    # with full-array blocks, no padding or post-slice.
    data2 = jax.random.normal(kd2, (2, 7, 60, 60), jnp.float32)
    out2 = jax.block_until_ready(model_forward(data2, params=params))
    ref2 = reference_forward(data2, params)
    assert out2.shape == (2, 64, 30, 30), out2.shape
    assert jnp.allclose(out2, ref2, atol=1e-4, rtol=1e-3), "ragged mismatch vs JAX reference"

    print("KERNEL_OK")
</pallas_src>

<mosaic_0001>
module attributes {stable_mosaic.version = 11 : i64} {
  func.func @fused_subsample_conv_kernel(%arg0: i32, %arg1: memref<1x7x64x64xf32, #tpu.memory_space<vmem>>, %arg2: memref<64x8xf32, #tpu.memory_space<vmem>>, %arg3: memref<32x64xf32, #tpu.memory_space<vmem>>, %arg4: memref<64x32xf32, #tpu.memory_space<vmem>>, %arg5: memref<1x64x1024xf32, #tpu.memory_space<vmem>>, %arg6: memref<8x1024xf32, #tpu.memory_space<vmem>>) attributes {dimension_semantics = [#tpu.dimension_semantics<parallel>], iteration_bounds = array<i64: 2>, scalar_prefetch = 0 : i64, scratch_operands = 1 : i64, tpu.core_type = #tpu.core_type<tc>, window_params = [{transform_indices = @transform_0, window_bounds = array<i64: 1, 7, 64, 64>}, {pipeline_mode = #tpu.pipeline_mode<synchronous>, transform_indices = @transform_1, window_bounds = array<i64: 64, 8>}, {pipeline_mode = #tpu.pipeline_mode<synchronous>, transform_indices = @transform_2, window_bounds = array<i64: 32, 64>}, {pipeline_mode = #tpu.pipeline_mode<synchronous>, transform_indices = @transform_3, window_bounds = array<i64: 64, 32>}, {transform_indices = @transform_4, window_bounds = array<i64: 1, 64, 1024>}]} {
    %c0 = arith.constant 0 : index
    %c0_0 = arith.constant 0 : index
    %0 = vector.load %arg3[%c0, %c0_0] : memref<32x64xf32, #tpu.memory_space<vmem>>, vector<32x64xf32>
    %c0_1 = arith.constant 0 : index
    %c0_2 = arith.constant 0 : index
    %1 = vector.load %arg4[%c0_1, %c0_2] : memref<64x32xf32, #tpu.memory_space<vmem>>, vector<64x32xf32>
    %c0_3 = arith.constant 0 : index
    %c0_4 = arith.constant 0 : index
    %c0_5 = arith.constant 0 : index
    %c0_6 = arith.constant 0 : index
    %2 = vector.load %arg1[%c0_3, %c0_4, %c0_5, %c0_6] : memref<1x7x64x64xf32, #tpu.memory_space<vmem>>, vector<1x7x64x64xf32>
    %3 = vector.shape_cast %2 : vector<1x7x64x64xf32> to vector<7x64x64xf32>
    %4 = vector.extract_strided_slice %3 {offsets = [0, 0, 0], sizes = [1, 64, 64], strides = [1, 1, 1]} : vector<7x64x64xf32> to vector<1x64x64xf32>
    %5 = vector.shape_cast %4 : vector<1x64x64xf32> to vector<64x64xf32>
    %cst = arith.constant dense<0.000000e+00> : vector<64x32xf32>
    %6 = tpu.matmul %5, %1, %cst {dimension_numbers = #tpu.dot_dimension_numbers<[1], [0], [0], [1], [0, 0, 1, 1], [], []>} : vector<64x64xf32>, vector<64x32xf32>, vector<64x32xf32> -> vector<64x32xf32>
    %cst_7 = arith.constant dense<0.000000e+00> : vector<32x32xf32>
    %7 = tpu.matmul %0, %6, %cst_7 {dimension_numbers = #tpu.dot_dimension_numbers<[1], [0], [0], [1], [0, 0, 1, 1], [], []>} : vector<32x64xf32>, vector<64x32xf32>, vector<32x32xf32> -> vector<32x32xf32>
    %8 = vector.extract_strided_slice %3 {offsets = [1, 0, 0], sizes = [1, 64, 64], strides = [1, 1, 1]} : vector<7x64x64xf32> to vector<1x64x64xf32>
    %9 = vector.shape_cast %8 : vector<1x64x64xf32> to vector<64x64xf32>
    %cst_8 = arith.constant dense<0.000000e+00> : vector<64x32xf32>
    %10 = tpu.matmul %9, %1, %cst_8 {dimension_numbers = #tpu.dot_dimension_numbers<[1], [0], [0], [1], [0, 0, 1, 1], [], []>} : vector<64x64xf32>, vector<64x32xf32>, vector<64x32xf32> -> vector<64x32xf32>
    %cst_9 = arith.constant dense<0.000000e+00> : vector<32x32xf32>
    %11 = tpu.matmul %0, %10, %cst_9 {dimension_numbers = #tpu.dot_dimension_numbers<[1], [0], [0], [1], [0, 0, 1, 1], [], []>} : vector<32x64xf32>, vector<64x32xf32>, vector<32x32xf32> -> vector<32x32xf32>
    %12 = vector.extract_strided_slice %3 {offsets = [2, 0, 0], sizes = [1, 64, 64], strides = [1, 1, 1]} : vector<7x64x64xf32> to vector<1x64x64xf32>
    %13 = vector.shape_cast %12 : vector<1x64x64xf32> to vector<64x64xf32>
    %cst_10 = arith.constant dense<0.000000e+00> : vector<64x32xf32>
    %14 = tpu.matmul %13, %1, %cst_10 {dimension_numbers = #tpu.dot_dimension_numbers<[1], [0], [0], [1], [0, 0, 1, 1], [], []>} : vector<64x64xf32>, vector<64x32xf32>, vector<64x32xf32> -> vector<64x32xf32>
    %cst_11 = arith.constant dense<0.000000e+00> : vector<32x32xf32>
    %15 = tpu.matmul %0, %14, %cst_11 {dimension_numbers = #tpu.dot_dimension_numbers<[1], [0], [0], [1], [0, 0, 1, 1], [], []>} : vector<32x64xf32>, vector<64x32xf32>, vector<32x32xf32> -> vector<32x32xf32>
    %16 = vector.extract_strided_slice %3 {offsets = [3, 0, 0], sizes = [1, 64, 64], strides = [1, 1, 1]} : vector<7x64x64xf32> to vector<1x64x64xf32>
    %17 = vector.shape_cast %16 : vector<1x64x64xf32> to vector<64x64xf32>
    %cst_12 = arith.constant dense<0.000000e+00> : vector<64x32xf32>
    %18 = tpu.matmul %17, %1, %cst_12 {dimension_numbers = #tpu.dot_dimension_numbers<[1], [0], [0], [1], [0, 0, 1, 1], [], []>} : vector<64x64xf32>, vector<64x32xf32>, vector<64x32xf32> -> vector<64x32xf32>
    %cst_13 = arith.constant dense<0.000000e+00> : vector<32x32xf32>
    %19 = tpu.matmul %0, %18, %cst_13 {dimension_numbers = #tpu.dot_dimension_numbers<[1], [0], [0], [1], [0, 0, 1, 1], [], []>} : vector<32x64xf32>, vector<64x32xf32>, vector<32x32xf32> -> vector<32x32xf32>
    %20 = vector.extract_strided_slice %3 {offsets = [4, 0, 0], sizes = [1, 64, 64], strides = [1, 1, 1]} : vector<7x64x64xf32> to vector<1x64x64xf32>
    %21 = vector.shape_cast %20 : vector<1x64x64xf32> to vector<64x64xf32>
    %cst_14 = arith.constant dense<0.000000e+00> : vector<64x32xf32>
    %22 = tpu.matmul %21, %1, %cst_14 {dimension_numbers = #tpu.dot_dimension_numbers<[1], [0], [0], [1], [0, 0, 1, 1], [], []>} : vector<64x64xf32>, vector<64x32xf32>, vector<64x32xf32> -> vector<64x32xf32>
    %cst_15 = arith.constant dense<0.000000e+00> : vector<32x32xf32>
    %23 = tpu.matmul %0, %22, %cst_15 {dimension_numbers = #tpu.dot_dimension_numbers<[1], [0], [0], [1], [0, 0, 1, 1], [], []>} : vector<32x64xf32>, vector<64x32xf32>, vector<32x32xf32> -> vector<32x32xf32>
    %24 = vector.extract_strided_slice %3 {offsets = [5, 0, 0], sizes = [1, 64, 64], strides = [1, 1, 1]} : vector<7x64x64xf32> to vector<1x64x64xf32>
    %25 = vector.shape_cast %24 : vector<1x64x64xf32> to vector<64x64xf32>
    %cst_16 = arith.constant dense<0.000000e+00> : vector<64x32xf32>
    %26 = tpu.matmul %25, %1, %cst_16 {dimension_numbers = #tpu.dot_dimension_numbers<[1], [0], [0], [1], [0, 0, 1, 1], [], []>} : vector<64x64xf32>, vector<64x32xf32>, vector<64x32xf32> -> vector<64x32xf32>
    %cst_17 = arith.constant dense<0.000000e+00> : vector<32x32xf32>
    %27 = tpu.matmul %0, %26, %cst_17 {dimension_numbers = #tpu.dot_dimension_numbers<[1], [0], [0], [1], [0, 0, 1, 1], [], []>} : vector<32x64xf32>, vector<64x32xf32>, vector<32x32xf32> -> vector<32x32xf32>
    %28 = vector.extract_strided_slice %3 {offsets = [6, 0, 0], sizes = [1, 64, 64], strides = [1, 1, 1]} : vector<7x64x64xf32> to vector<1x64x64xf32>
    %29 = vector.shape_cast %28 : vector<1x64x64xf32> to vector<64x64xf32>
    %cst_18 = arith.constant dense<0.000000e+00> : vector<64x32xf32>
    %30 = tpu.matmul %29, %1, %cst_18 {dimension_numbers = #tpu.dot_dimension_numbers<[1], [0], [0], [1], [0, 0, 1, 1], [], []>} : vector<64x64xf32>, vector<64x32xf32>, vector<64x32xf32> -> vector<64x32xf32>
    %cst_19 = arith.constant dense<0.000000e+00> : vector<32x32xf32>
    %31 = tpu.matmul %0, %30, %cst_19 {dimension_numbers = #tpu.dot_dimension_numbers<[1], [0], [0], [1], [0, 0, 1, 1], [], []>} : vector<32x64xf32>, vector<64x32xf32>, vector<32x32xf32> -> vector<32x32xf32>
    %cst_20 = arith.constant 1.000000e+00 : f32
    %32 = vector.broadcast %cst_20 : f32 to vector<1x1024xf32>
    %c7 = arith.constant 7 : index
    %c0_21 = arith.constant 0 : index
    %33 = vector.load %arg6[%c7, %c0_21] : memref<8x1024xf32, #tpu.memory_space<vmem>>, vector<1x1024xf32>
    tpu.vector_store %arg6[%c7, %c0_21], %32 {strides = array<i32>} : memref<8x1024xf32, #tpu.memory_space<vmem>>, vector<1x1024xf32>,
    %34 = vector.extract_strided_slice %7 {offsets = [0, 0], sizes = [1, 32], strides = [1, 1]} : vector<32x32xf32> to vector<1x32xf32>
    %35 = vector.extract_strided_slice %11 {offsets = [0, 0], sizes = [1, 32], strides = [1, 1]} : vector<32x32xf32> to vector<1x32xf32>
    %36 = vector.extract_strided_slice %15 {offsets = [0, 0], sizes = [1, 32], strides = [1, 1]} : vector<32x32xf32> to vector<1x32xf32>
    %37 = vector.extract_strided_slice %19 {offsets = [0, 0], sizes = [1, 32], strides = [1, 1]} : vector<32x32xf32> to vector<1x32xf32>
    %38 = vector.extract_strided_slice %23 {offsets = [0, 0], sizes = [1, 32], strides = [1, 1]} : vector<32x32xf32> to vector<1x32xf32>
    %39 = vector.extract_strided_slice %27 {offsets = [0, 0], sizes = [1, 32], strides = [1, 1]} : vector<32x32xf32> to vector<1x32xf32>
    %40 = vector.extract_strided_slice %31 {offsets = [0, 0], sizes = [1, 32], strides = [1, 1]} : vector<32x32xf32> to vector<1x32xf32>
    %41 = tpu.concatenate %34, %35, %36, %37, %38, %39, %40 in 0 : vector<1x32xf32>, vector<1x32xf32>, vector<1x32xf32>, vector<1x32xf32>, vector<1x32xf32>, vector<1x32xf32>, vector<1x32xf32> -> vector<7x32xf32>
    %c0_22 = arith.constant 0 : index
    %c0_23 = arith.constant 0 : index
    %42 = vector.load %arg6[%c0_22, %c0_23] : memref<8x1024xf32, #tpu.memory_space<vmem>>, vector<7x32xf32>
    tpu.vector_store %arg6[%c0_22, %c0_23], %41 {strides = array<i32>} : memref<8x1024xf32, #tpu.memory_space<vmem>>, vector<7x32xf32>,
    %43 = vector.extract_strided_slice %7 {offsets = [1, 0], sizes = [1, 32], strides = [1, 1]} : vector<32x32xf32> to vector<1x32xf32>
    %44 = vector.extract_strided_slice %11 {offsets = [1, 0], sizes = [1, 32], strides = [1, 1]} : vector<32x32xf32> to vector<1x32xf32>
    %45 = vector.extract_strided_slice %15 {offsets = [1, 0], sizes = [1, 32], strides = [1, 1]} : vector<32x32xf32> to vector<1x32xf32>
    %46 = vector.extract_strided_slice %19 {offsets = [1, 0], sizes = [1, 32], strides = [1, 1]} : vector<32x32xf32> to vector<1x32xf32>
    %47 = vector.extract_strided_slice %23 {offsets = [1, 0], sizes = [1, 32], strides = [1, 1]} : vector<32x32xf32> to vector<1x32xf32>
    %48 = vector.extract_strided_slice %27 {offsets = [1, 0], sizes = [1, 32], strides = [1, 1]} : vector<32x32xf32> to vector<1x32xf32>
    %49 = vector.extract_strided_slice %31 {offsets = [1, 0], sizes = [1, 32], strides = [1, 1]} : vector<32x32xf32> to vector<1x32xf32>
    %50 = tpu.concatenate %43, %44, %45, %46, %47, %48, %49 in 0 : vector<1x32xf32>, vector<1x32xf32>, vector<1x32xf32>, vector<1x32xf32>, vector<1x32xf32>, vector<1x32xf32>, vector<1x32xf32> -> vector<7x32xf32>
    %c0_24 = arith.constant 0 : index
    %c32 = arith.constant 32 : index
    %51 = vector.load %arg6[%c0_24, %c32] : memref<8x1024xf32, #tpu.memory_space<vmem>>, vector<7x32xf32>
    tpu.vector_store %arg6[%c0_24, %c32], %50 {strides = array<i32>} : memref<8x1024xf32, #tpu.memory_space<vmem>>, vector<7x32xf32>,
    %52 = vector.extract_strided_slice %7 {offsets = [2, 0], sizes = [1, 32], strides = [1, 1]} : vector<32x32xf32> to vector<1x32xf32>
    %53 = vector.extract_strided_slice %11 {offsets = [2, 0], sizes = [1, 32], strides = [1, 1]} : vector<32x32xf32> to vector<1x32xf32>
    %54 = vector.extract_strided_slice %15 {offsets = [2, 0], sizes = [1, 32], strides = [1, 1]} : vector<32x32xf32> to vector<1x32xf32>
    %55 = vector.extract_strided_slice %19 {offsets = [2, 0], sizes = [1, 32], strides = [1, 1]} : vector<32x32xf32> to vector<1x32xf32>
    %56 = vector.extract_strided_slice %23 {offsets = [2, 0], sizes = [1, 32], strides = [1, 1]} : vector<32x32xf32> to vector<1x32xf32>
    %57 = vector.extract_strided_slice %27 {offsets = [2, 0], sizes = [1, 32], strides = [1, 1]} : vector<32x32xf32> to vector<1x32xf32>
    %58 = vector.extract_strided_slice %31 {offsets = [2, 0], sizes = [1, 32], strides = [1, 1]} : vector<32x32xf32> to vector<1x32xf32>
    %59 = tpu.concatenate %52, %53, %54, %55, %56, %57, %58 in 0 : vector<1x32xf32>, vector<1x32xf32>, vector<1x32xf32>, vector<1x32xf32>, vector<1x32xf32>, vector<1x32xf32>, vector<1x32xf32> -> vector<7x32xf32>
    %c0_25 = arith.constant 0 : index
    %c64 = arith.constant 64 : index
    %60 = vector.load %arg6[%c0_25, %c64] : memref<8x1024xf32, #tpu.memory_space<vmem>>, vector<7x32xf32>
    tpu.vector_store %arg6[%c0_25, %c64], %59 {strides = array<i32>} : memref<8x1024xf32, #tpu.memory_space<vmem>>, vector<7x32xf32>,
    %61 = vector.extract_strided_slice %7 {offsets = [3, 0], sizes = [1, 32], strides = [1, 1]} : vector<32x32xf32> to vector<1x32xf32>
    %62 = vector.extract_strided_slice %11 {offsets = [3, 0], sizes = [1, 32], strides = [1, 1]} : vector<32x32xf32> to vector<1x32xf32>
    %63 = vector.extract_strided_slice %15 {offsets = [3, 0], sizes = [1, 32], strides = [1, 1]} : vector<32x32xf32> to vector<1x32xf32>
    %64 = vector.extract_strided_slice %19 {offsets = [3, 0], sizes = [1, 32], strides = [1, 1]} : vector<32x32xf32> to vector<1x32xf32>
    %65 = vector.extract_strided_slice %23 {offsets = [3, 0], sizes = [1, 32], strides = [1, 1]} : vector<32x32xf32> to vector<1x32xf32>
    %66 = vector.extract_strided_slice %27 {offsets = [3, 0], sizes = [1, 32], strides = [1, 1]} : vector<32x32xf32> to vector<1x32xf32>
    %67 = vector.extract_strided_slice %31 {offsets = [3, 0], sizes = [1, 32], strides = [1, 1]} : vector<32x32xf32> to vector<1x32xf32>
    %68 = tpu.concatenate %61, %62, %63, %64, %65, %66, %67 in 0 : vector<1x32xf32>, vector<1x32xf32>, vector<1x32xf32>, vector<1x32xf32>, vector<1x32xf32>, vector<1x32xf32>, vector<1x32xf32> -> vector<7x32xf32>
    %c0_26 = arith.constant 0 : index
    %c96 = arith.constant 96 : index
    %69 = vector.load %arg6[%c0_26, %c96] : memref<8x1024xf32, #tpu.memory_space<vmem>>, vector<7x32xf32>
    tpu.vector_store %arg6[%c0_26, %c96], %68 {strides = array<i32>} : memref<8x1024xf32, #tpu.memory_space<vmem>>, vector<7x32xf32>,
    %70 = vector.extract_strided_slice %7 {offsets = [4, 0], sizes = [1, 32], strides = [1, 1]} : vector<32x32xf32> to vector<1x32xf32>
    %71 = vector.extract_strided_slice %11 {offsets = [4, 0], sizes = [1, 32], strides = [1, 1]} : vector<32x32xf32> to vector<1x32xf32>
    %72 = vector.extract_strided_slice %15 {offsets = [4, 0], sizes = [1, 32], strides = [1, 1]} : vector<32x32xf32> to vector<1x32xf32>
    %73 = vector.extract_strided_slice %19 {offsets = [4, 0], sizes = [1, 32], strides = [1, 1]} : vector<32x32xf32> to vector<1x32xf32>
    %74 = vector.extract_strided_slice %23 {offsets = [4, 0], sizes = [1, 32], strides = [1, 1]} : vector<32x32xf32> to vector<1x32xf32>
    %75 = vector.extract_strided_slice %27 {offsets = [4, 0], sizes = [1, 32], strides = [1, 1]} : vector<32x32xf32> to vector<1x32xf32>
    %76 = vector.extract_strided_slice %31 {offsets = [4, 0], sizes = [1, 32], strides = [1, 1]} : vector<32x32xf32> to vector<1x32xf32>
    %77 = tpu.concatenate %70, %71, %72, %73, %74, %75, %76 in 0 : vector<1x32xf32>, vector<1x32xf32>, vector<1x32xf32>, vector<1x32xf32>, vector<1x32xf32>, vector<1x32xf32>, vector<1x32xf32> -> vector<7x32xf32>
    %c0_27 = arith.constant 0 : index
    %c128 = arith.constant 128 : index
    %78 = vector.load %arg6[%c0_27, %c128] : memref<8x1024xf32, #tpu.memory_space<vmem>>, vector<7x32xf32>
    tpu.vector_store %arg6[%c0_27, %c128], %77 {strides = array<i32>} : memref<8x1024xf32, #tpu.memory_space<vmem>>, vector<7x32xf32>,
    %79 = vector.extract_strided_slice %7 {offsets = [5, 0], sizes = [1, 32], strides = [1, 1]} : vector<32x32xf32> to vector<1x32xf32>
    %80 = vector.extract_strided_slice %11 {offsets = [5, 0], sizes = [1, 32], strides = [1, 1]} : vector<32x32xf32> to vector<1x32xf32>
    %81 = vector.extract_strided_slice %15 {offsets = [5, 0], sizes = [1, 32], strides = [1, 1]} : vector<32x32xf32> to vector<1x32xf32>
    %82 = vector.extract_strided_slice %19 {offsets = [5, 0], sizes = [1, 32], strides = [1, 1]} : vector<32x32xf32> to vector<1x32xf32>
    %83 = vector.extract_strided_slice %23 {offsets = [5, 0], sizes = [1, 32], strides = [1, 1]} : vector<32x32xf32> to vector<1x32xf32>
    %84 = vector.extract_strided_slice %27 {offsets = [5, 0], sizes = [1, 32], strides = [1, 1]} : vector<32x32xf32> to vector<1x32xf32>
    %85 = vector.extract_strided_slice %31 {offsets = [5, 0], sizes = [1, 32], strides = [1, 1]} : vector<32x32xf32> to vector<1x32xf32>
    %86 = tpu.concatenate %79, %80, %81, %82, %83, %84, %85 in 0 : vector<1x32xf32>, vector<1x32xf32>, vector<1x32xf32>, vector<1x32xf32>, vector<1x32xf32>, vector<1x32xf32>, vector<1x32xf32> -> vector<7x32xf32>
    %c0_28 = arith.constant 0 : index
    %c160 = arith.constant 160 : index
    %87 = vector.load %arg6[%c0_28, %c160] : memref<8x1024xf32, #tpu.memory_space<vmem>>, vector<7x32xf32>
    tpu.vector_store %arg6[%c0_28, %c160], %86 {strides = array<i32>} : memref<8x1024xf32, #tpu.memory_space<vmem>>, vector<7x32xf32>,
    %88 = vector.extract_strided_slice %7 {offsets = [6, 0], sizes = [1, 32], strides = [1, 1]} : vector<32x32xf32> to vector<1x32xf32>
    %89 = vector.extract_strided_slice %11 {offsets = [6, 0], sizes = [1, 32], strides = [1, 1]} : vector<32x32xf32> to vector<1x32xf32>
    %90 = vector.extract_strided_slice %15 {offsets = [6, 0], sizes = [1, 32], strides = [1, 1]} : vector<32x32xf32> to vector<1x32xf32>
    %91 = vector.extract_strided_slice %19 {offsets = [6, 0], sizes = [1, 32], strides = [1, 1]} : vector<32x32xf32> to vector<1x32xf32>
    %92 = vector.extract_strided_slice %23 {offsets = [6, 0], sizes = [1, 32], strides = [1, 1]} : vector<32x32xf32> to vector<1x32xf32>
    %93 = vector.extract_strided_slice %27 {offsets = [6, 0], sizes = [1, 32], strides = [1, 1]} : vector<32x32xf32> to vector<1x32xf32>
    %94 = vector.extract_strided_slice %31 {offsets = [6, 0], sizes = [1, 32], strides = [1, 1]} : vector<32x32xf32> to vector<1x32xf32>
    %95 = tpu.concatenate %88, %89, %90, %91, %92, %93, %94 in 0 : vector<1x32xf32>, vector<1x32xf32>, vector<1x32xf32>, vector<1x32xf32>, vector<1x32xf32>, vector<1x32xf32>, vector<1x32xf32> -> vector<7x32xf32>
    %c0_29 = arith.constant 0 : index
    %c192 = arith.constant 192 : index
    %96 = vector.load %arg6[%c0_29, %c192] : memref<8x1024xf32, #tpu.memory_space<vmem>>, vector<7x32xf32>
    tpu.vector_store %arg6[%c0_29, %c192], %95 {strides = array<i32>} : memref<8x1024xf32, #tpu.memory_space<vmem>>, vector<7x32xf32>,
    %97 = vector.extract_strided_slice %7 {offsets = [7, 0], sizes = [1, 32], strides = [1, 1]} : vector<32x32xf32> to vector<1x32xf32>
    %98 = vector.extract_strided_slice %11 {offsets = [7, 0], sizes = [1, 32], strides = [1, 1]} : vector<32x32xf32> to vector<1x32xf32>
    %99 = vector.extract_strided_slice %15 {offsets = [7, 0], sizes = [1, 32], strides = [1, 1]} : vector<32x32xf32> to vector<1x32xf32>
    %100 = vector.extract_strided_slice %19 {offsets = [7, 0], sizes = [1, 32], strides = [1, 1]} : vector<32x32xf32> to vector<1x32xf32>
    %101 = vector.extract_strided_slice %23 {offsets = [7, 0], sizes = [1, 32], strides = [1, 1]} : vector<32x32xf32> to vector<1x32xf32>
    %102 = vector.extract_strided_slice %27 {offsets = [7, 0], sizes = [1, 32], strides = [1, 1]} : vector<32x32xf32> to vector<1x32xf32>
    %103 = vector.extract_strided_slice %31 {offsets = [7, 0], sizes = [1, 32], strides = [1, 1]} : vector<32x32xf32> to vector<1x32xf32>
    %104 = tpu.concatenate %97, %98, %99, %100, %101, %102, %103 in 0 : vector<1x32xf32>, vector<1x32xf32>, vector<1x32xf32>, vector<1x32xf32>, vector<1x32xf32>, vector<1x32xf32>, vector<1x32xf32> -> vector<7x32xf32>
    %c0_30 = arith.constant 0 : index
    %c224 = arith.constant 224 : index
    %105 = vector.load %arg6[%c0_30, %c224] : memref<8x1024xf32, #tpu.memory_space<vmem>>, vector<7x32xf32>
    tpu.vector_store %arg6[%c0_30, %c224], %104 {strides = array<i32>} : memref<8x1024xf32, #tpu.memory_space<vmem>>, vector<7x32xf32>,
    %106 = vector.extract_strided_slice %7 {offsets = [8, 0], sizes = [1, 32], strides = [1, 1]} : vector<32x32xf32> to vector<1x32xf32>
    %107 = vector.extract_strided_slice %11 {offsets = [8, 0], sizes = [1, 32], strides = [1, 1]} : vector<32x32xf32> to vector<1x32xf32>
    %108 = vector.extract_strided_slice %15 {offsets = [8, 0], sizes = [1, 32], strides = [1, 1]} : vector<32x32xf32> to vector<1x32xf32>
    %109 = vector.extract_strided_slice %19 {offsets = [8, 0], sizes = [1, 32], strides = [1, 1]} : vector<32x32xf32> to vector<1x32xf32>
    %110 = vector.extract_strided_slice %23 {offsets = [8, 0], sizes = [1, 32], strides = [1, 1]} : vector<32x32xf32> to vector<1x32xf32>
    %111 = vector.extract_strided_slice %27 {offsets = [8, 0], sizes = [1, 32], strides = [1, 1]} : vector<32x32xf32> to vector<1x32xf32>
    %112 = vector.extract_strided_slice %31 {offsets = [8, 0], sizes = [1, 32], strides = [1, 1]} : vector<32x32xf32> to vector<1x32xf32>
    %113 = tpu.concatenate %106, %107, %108, %109, %110, %111, %112 in 0 : vector<1x32xf32>, vector<1x32xf32>, vector<1x32xf32>, vector<1x32xf32>, vector<1x32xf32>, vector<1x32xf32>, vector<1x32xf32> -> vector<7x32xf32>
    %c0_31 = arith.constant 0 : index
    %c256 = arith.constant 256 : index
    %114 = vector.load %arg6[%c0_31, %c256] : memref<8x1024xf32, #tpu.memory_space<vmem>>, vector<7x32xf32>
    tpu.vector_store %arg6[%c0_31, %c256], %113 {strides = array<i32>} : memref<8x1024xf32, #tpu.memory_space<vmem>>, vector<7x32xf32>,
    %115 = vector.extract_strided_slice %7 {offsets = [9, 0], sizes = [1, 32], strides = [1, 1]} : vector<32x32xf32> to vector<1x32xf32>
    %116 = vector.extract_strided_slice %11 {offsets = [9, 0], sizes = [1, 32], strides = [1, 1]} : vector<32x32xf32> to vector<1x32xf32>
    %117 = vector.extract_strided_slice %15 {offsets = [9, 0], sizes = [1, 32], strides = [1, 1]} : vector<32x32xf32> to vector<1x32xf32>
    %118 = vector.extract_strided_slice %19 {offsets = [9, 0], sizes = [1, 32], strides = [1, 1]} : vector<32x32xf32> to vector<1x32xf32>
    %119 = vector.extract_strided_slice %23 {offsets = [9, 0], sizes = [1, 32], strides = [1, 1]} : vector<32x32xf32> to vector<1x32xf32>
    %120 = vector.extract_strided_slice %27 {offsets = [9, 0], sizes = [1, 32], strides = [1, 1]} : vector<32x32xf32> to vector<1x32xf32>
    %121 = vector.extract_strided_slice %31 {offsets = [9, 0], sizes = [1, 32], strides = [1, 1]} : vector<32x32xf32> to vector<1x32xf32>
    %122 = tpu.concatenate %115, %116, %117, %118, %119, %120, %121 in 0 : vector<1x32xf32>, vector<1x32xf32>, vector<1x32xf32>, vector<1x32xf32>, vector<1x32xf32>, vector<1x32xf32>, vector<1x32xf32> -> vector<7x32xf32>
    %c0_32 = arith.constant 0 : index
    %c288 = arith.constant 288 : index
    %123 = vector.load %arg6[%c0_32, %c288] : memref<8x1024xf32, #tpu.memory_space<vmem>>, vector<7x32xf32>
    tpu.vector_store %arg6[%c0_32, %c288], %122 {strides = array<i32>} : memref<8x1024xf32, #tpu.memory_space<vmem>>, vector<7x32xf32>,
    %124 = vector.extract_strided_slice %7 {offsets = [10, 0], sizes = [1, 32], strides = [1, 1]} : vector<32x32xf32> to vector<1x32xf32>
    %125 = vector.extract_strided_slice %11 {offsets = [10, 0], sizes = [1, 32], strides = [1, 1]} : vector<32x32xf32> to vector<1x32xf32>
    %126 = vector.extract_strided_slice %15 {offsets = [10, 0], sizes = [1, 32], strides = [1, 1]} : vector<32x32xf32> to vector<1x32xf32>
    %127 = vector.extract_strided_slice %19 {offsets = [10, 0], sizes = [1, 32], strides = [1, 1]} : vector<32x32xf32> to vector<1x32xf32>
    %128 = vector.extract_strided_slice %23 {offsets = [10, 0], sizes = [1, 32], strides = [1, 1]} : vector<32x32xf32> to vector<1x32xf32>
    %129 = vector.extract_strided_slice %27 {offsets = [10, 0], sizes = [1, 32], strides = [1, 1]} : vector<32x32xf32> to vector<1x32xf32>
    %130 = vector.extract_strided_slice %31 {offsets = [10, 0], sizes = [1, 32], strides = [1, 1]} : vector<32x32xf32> to vector<1x32xf32>
    %131 = tpu.concatenate %124, %125, %126, %127, %128, %129, %130 in 0 : vector<1x32xf32>, vector<1x32xf32>, vector<1x32xf32>, vector<1x32xf32>, vector<1x32xf32>, vector<1x32xf32>, vector<1x32xf32> -> vector<7x32xf32>
    %c0_33 = arith.constant 0 : index
    %c320 = arith.constant 320 : index
    %132 = vector.load %arg6[%c0_33, %c320] : memref<8x1024xf32, #tpu.memory_space<vmem>>, vector<7x32xf32>
    tpu.vector_store %arg6[%c0_33, %c320], %131 {strides = array<i32>} : memref<8x1024xf32, #tpu.memory_space<vmem>>, vector<7x32xf32>,
    %133 = vector.extract_strided_slice %7 {offsets = [11, 0], sizes = [1, 32], strides = [1, 1]} : vector<32x32xf32> to vector<1x32xf32>
    %134 = vector.extract_strided_slice %11 {offsets = [11, 0], sizes = [1, 32], strides = [1, 1]} : vector<32x32xf32> to vector<1x32xf32>
    %135 = vector.extract_strided_slice %15 {offsets = [11, 0], sizes = [1, 32], strides = [1, 1]} : vector<32x32xf32> to vector<1x32xf32>
    %136 = vector.extract_strided_slice %19 {offsets = [11, 0], sizes = [1, 32], strides = [1, 1]} : vector<32x32xf32> to vector<1x32xf32>
    %137 = vector.extract_strided_slice %23 {offsets = [11, 0], sizes = [1, 32], strides = [1, 1]} : vector<32x32xf32> to vector<1x32xf32>
    %138 = vector.extract_strided_slice %27 {offsets = [11, 0], sizes = [1, 32], strides = [1, 1]} : vector<32x32xf32> to vector<1x32xf32>
    %139 = vector.extract_strided_slice %31 {offsets = [11, 0], sizes = [1, 32], strides = [1, 1]} : vector<32x32xf32> to vector<1x32xf32>
    %140 = tpu.concatenate %133, %134, %135, %136, %137, %138, %139 in 0 : vector<1x32xf32>, vector<1x32xf32>, vector<1x32xf32>, vector<1x32xf32>, vector<1x32xf32>, vector<1x32xf32>, vector<1x32xf32> -> vector<7x32xf32>
    %c0_34 = arith.constant 0 : index
    %c352 = arith.constant 352 : index
    %141 = vector.load %arg6[%c0_34, %c352] : memref<8x1024xf32, #tpu.memory_space<vmem>>, vector<7x32xf32>
    tpu.vector_store %arg6[%c0_34, %c352], %140 {strides = array<i32>} : memref<8x1024xf32, #tpu.memory_space<vmem>>, vector<7x32xf32>,
    %142 = vector.extract_strided_slice %7 {offsets = [12, 0], sizes = [1, 32], strides = [1, 1]} : vector<32x32xf32> to vector<1x32xf32>
    %143 = vector.extract_strided_slice %11 {offsets = [12, 0], sizes = [1, 32], strides = [1, 1]} : vector<32x32xf32> to vector<1x32xf32>
    %144 = vector.extract_strided_slice %15 {offsets = [12, 0], sizes = [1, 32], strides = [1, 1]} : vector<32x32xf32> to vector<1x32xf32>
    %145 = vector.extract_strided_slice %19 {offsets = [12, 0], sizes = [1, 32], strides = [1, 1]} : vector<32x32xf32> to vector<1x32xf32>
    %146 = vector.extract_strided_slice %23 {offsets = [12, 0], sizes = [1, 32], strides = [1, 1]} : vector<32x32xf32> to vector<1x32xf32>
    %147 = vector.extract_strided_slice %27 {offsets = [12, 0], sizes = [1, 32], strides = [1, 1]} : vector<32x32xf32> to vector<1x32xf32>
    %148 = vector.extract_strided_slice %31 {offsets = [12, 0], sizes = [1, 32], strides = [1, 1]} : vector<32x32xf32> to vector<1x32xf32>
    %149 = tpu.concatenate %142, %143, %144, %145, %146, %147, %148 in 0 : vector<1x32xf32>, vector<1x32xf32>, vector<1x32xf32>, vector<1x32xf32>, vector<1x32xf32>, vector<1x32xf32>, vector<1x32xf32> -> vector<7x32xf32>
    %c0_35 = arith.constant 0 : index
    %c384 = arith.constant 384 : index
    %150 = vector.load %arg6[%c0_35, %c384] : memref<8x1024xf32, #tpu.memory_space<vmem>>, vector<7x32xf32>
    tpu.vector_store %arg6[%c0_35, %c384], %149 {strides = array<i32>} : memref<8x1024xf32, #tpu.memory_space<vmem>>, vector<7x32xf32>,
    %151 = vector.extract_strided_slice %7 {offsets = [13, 0], sizes = [1, 32], strides = [1, 1]} : vector<32x32xf32> to vector<1x32xf32>
    %152 = vector.extract_strided_slice %11 {offsets = [13, 0], sizes = [1, 32], strides = [1, 1]} : vector<32x32xf32> to vector<1x32xf32>
    %153 = vector.extract_strided_slice %15 {offsets = [13, 0], sizes = [1, 32], strides = [1, 1]} : vector<32x32xf32> to vector<1x32xf32>
    %154 = vector.extract_strided_slice %19 {offsets = [13, 0], sizes = [1, 32], strides = [1, 1]} : vector<32x32xf32> to vector<1x32xf32>
    %155 = vector.extract_strided_slice %23 {offsets = [13, 0], sizes = [1, 32], strides = [1, 1]} : vector<32x32xf32> to vector<1x32xf32>
    %156 = vector.extract_strided_slice %27 {offsets = [13, 0], sizes = [1, 32], strides = [1, 1]} : vector<32x32xf32> to vector<1x32xf32>
    %157 = vector.extract_strided_slice %31 {offsets = [13, 0], sizes = [1, 32], strides = [1, 1]} : vector<32x32xf32> to vector<1x32xf32>
    %158 = tpu.concatenate %151, %152, %153, %154, %155, %156, %157 in 0 : vector<1x32xf32>, vector<1x32xf32>, vector<1x32xf32>, vector<1x32xf32>, vector<1x32xf32>, vector<1x32xf32>, vector<1x32xf32> -> vector<7x32xf32>
    %c0_36 = arith.constant 0 : index
    %c416 = arith.constant 416 : index
    %159 = vector.load %arg6[%c0_36, %c416] : memref<8x1024xf32, #tpu.memory_space<vmem>>, vector<7x32xf32>
    tpu.vector_store %arg6[%c0_36, %c416], %158 {strides = array<i32>} : memref<8x1024xf32, #tpu.memory_space<vmem>>, vector<7x32xf32>,
    %160 = vector.extract_strided_slice %7 {offsets = [14, 0], sizes = [1, 32], strides = [1, 1]} : vector<32x32xf32> to vector<1x32xf32>
    %161 = vector.extract_strided_slice %11 {offsets = [14, 0], sizes = [1, 32], strides = [1, 1]} : vector<32x32xf32> to vector<1x32xf32>
    %162 = vector.extract_strided_slice %15 {offsets = [14, 0], sizes = [1, 32], strides = [1, 1]} : vector<32x32xf32> to vector<1x32xf32>
    %163 = vector.extract_strided_slice %19 {offsets = [14, 0], sizes = [1, 32], strides = [1, 1]} : vector<32x32xf32> to vector<1x32xf32>
    %164 = vector.extract_strided_slice %23 {offsets = [14, 0], sizes = [1, 32], strides = [1, 1]} : vector<32x32xf32> to vector<1x32xf32>
    %165 = vector.extract_strided_slice %27 {offsets = [14, 0], sizes = [1, 32], strides = [1, 1]} : vector<32x32xf32> to vector<1x32xf32>
    %166 = vector.extract_strided_slice %31 {offsets = [14, 0], sizes = [1, 32], strides = [1, 1]} : vector<32x32xf32> to vector<1x32xf32>
    %167 = tpu.concatenate %160, %161, %162, %163, %164, %165, %166 in 0 : vector<1x32xf32>, vector<1x32xf32>, vector<1x32xf32>, vector<1x32xf32>, vector<1x32xf32>, vector<1x32xf32>, vector<1x32xf32> -> vector<7x32xf32>
    %c0_37 = arith.constant 0 : index
    %c448 = arith.constant 448 : index
    %168 = vector.load %arg6[%c0_37, %c448] : memref<8x1024xf32, #tpu.memory_space<vmem>>, vector<7x32xf32>
    tpu.vector_store %arg6[%c0_37, %c448], %167 {strides = array<i32>} : memref<8x1024xf32, #tpu.memory_space<vmem>>, vector<7x32xf32>,
    %169 = vector.extract_strided_slice %7 {offsets = [15, 0], sizes = [1, 32], strides = [1, 1]} : vector<32x32xf32> to vector<1x32xf32>
    %170 = vector.extract_strided_slice %11 {offsets = [15, 0], sizes = [1, 32], strides = [1, 1]} : vector<32x32xf32> to vector<1x32xf32>
    %171 = vector.extract_strided_slice %15 {offsets = [15, 0], sizes = [1, 32], strides = [1, 1]} : vector<32x32xf32> to vector<1x32xf32>
    %172 = vector.extract_strided_slice %19 {offsets = [15, 0], sizes = [1, 32], strides = [1, 1]} : vector<32x32xf32> to vector<1x32xf32>
    %173 = vector.extract_strided_slice %23 {offsets = [15, 0], sizes = [1, 32], strides = [1, 1]} : vector<32x32xf32> to vector<1x32xf32>
    %174 = vector.extract_strided_slice %27 {offsets = [15, 0], sizes = [1, 32], strides = [1, 1]} : vector<32x32xf32> to vector<1x32xf32>
    %175 = vector.extract_strided_slice %31 {offsets = [15, 0], sizes = [1, 32], strides = [1, 1]} : vector<32x32xf32> to vector<1x32xf32>
    %176 = tpu.concatenate %169, %170, %171, %172, %173, %174, %175 in 0 : vector<1x32xf32>, vector<1x32xf32>, vector<1x32xf32>, vector<1x32xf32>, vector<1x32xf32>, vector<1x32xf32>, vector<1x32xf32> -> vector<7x32xf32>
    %c0_38 = arith.constant 0 : index
    %c480 = arith.constant 480 : index
    %177 = vector.load %arg6[%c0_38, %c480] : memref<8x1024xf32, #tpu.memory_space<vmem>>, vector<7x32xf32>
    tpu.vector_store %arg6[%c0_38, %c480], %176 {strides = array<i32>} : memref<8x1024xf32, #tpu.memory_space<vmem>>, vector<7x32xf32>,
    %178 = vector.extract_strided_slice %7 {offsets = [16, 0], sizes = [1, 32], strides = [1, 1]} : vector<32x32xf32> to vector<1x32xf32>
    %179 = vector.extract_strided_slice %11 {offsets = [16, 0], sizes = [1, 32], strides = [1, 1]} : vector<32x32xf32> to vector<1x32xf32>
    %180 = vector.extract_strided_slice %15 {offsets = [16, 0], sizes = [1, 32], strides = [1, 1]} : vector<32x32xf32> to vector<1x32xf32>
    %181 = vector.extract_strided_slice %19 {offsets = [16, 0], sizes = [1, 32], strides = [1, 1]} : vector<32x32xf32> to vector<1x32xf32>
    %182 = vector.extract_strided_slice %23 {offsets = [16, 0], sizes = [1, 32], strides = [1, 1]} : vector<32x32xf32> to vector<1x32xf32>
    %183 = vector.extract_strided_slice %27 {offsets = [16, 0], sizes = [1, 32], strides = [1, 1]} : vector<32x32xf32> to vector<1x32xf32>
    %184 = vector.extract_strided_slice %31 {offsets = [16, 0], sizes = [1, 32], strides = [1, 1]} : vector<32x32xf32> to vector<1x32xf32>
    %185 = tpu.concatenate %178, %179, %180, %181, %182, %183, %184 in 0 : vector<1x32xf32>, vector<1x32xf32>, vector<1x32xf32>, vector<1x32xf32>, vector<1x32xf32>, vector<1x32xf32>, vector<1x32xf32> -> vector<7x32xf32>
    %c0_39 = arith.constant 0 : index
    %c512 = arith.constant 512 : index
    %186 = vector.load %arg6[%c0_39, %c512] : memref<8x1024xf32, #tpu.memory_space<vmem>>, vector<7x32xf32>
    tpu.vector_store %arg6[%c0_39, %c512], %185 {strides = array<i32>} : memref<8x1024xf32, #tpu.memory_space<vmem>>, vector<7x32xf32>,
    %187 = vector.extract_strided_slice %7 {offsets = [17, 0], sizes = [1, 32], strides = [1, 1]} : vector<32x32xf32> to vector<1x32xf32>
    %188 = vector.extract_strided_slice %11 {offsets = [17, 0], sizes = [1, 32], strides = [1, 1]} : vector<32x32xf32> to vector<1x32xf32>
    %189 = vector.extract_strided_slice %15 {offsets = [17, 0], sizes = [1, 32], strides = [1, 1]} : vector<32x32xf32> to vector<1x32xf32>
    %190 = vector.extract_strided_slice %19 {offsets = [17, 0], sizes = [1, 32], strides = [1, 1]} : vector<32x32xf32> to vector<1x32xf32>
    %191 = vector.extract_strided_slice %23 {offsets = [17, 0], sizes = [1, 32], strides = [1, 1]} : vector<32x32xf32> to vector<1x32xf32>
    %192 = vector.extract_strided_slice %27 {offsets = [17, 0], sizes = [1, 32], strides = [1, 1]} : vector<32x32xf32> to vector<1x32xf32>
    %193 = vector.extract_strided_slice %31 {offsets = [17, 0], sizes = [1, 32], strides = [1, 1]} : vector<32x32xf32> to vector<1x32xf32>
    %194 = tpu.concatenate %187, %188, %189, %190, %191, %192, %193 in 0 : vector<1x32xf32>, vector<1x32xf32>, vector<1x32xf32>, vector<1x32xf32>, vector<1x32xf32>, vector<1x32xf32>, vector<1x32xf32> -> vector<7x32xf32>
    %c0_40 = arith.constant 0 : index
    %c544 = arith.constant 544 : index
    %195 = vector.load %arg6[%c0_40, %c544] : memref<8x1024xf32, #tpu.memory_space<vmem>>, vector<7x32xf32>
    tpu.vector_store %arg6[%c0_40, %c544], %194 {strides = array<i32>} : memref<8x1024xf32, #tpu.memory_space<vmem>>, vector<7x32xf32>,
    %196 = vector.extract_strided_slice %7 {offsets = [18, 0], sizes = [1, 32], strides = [1, 1]} : vector<32x32xf32> to vector<1x32xf32>
    %197 = vector.extract_strided_slice %11 {offsets = [18, 0], sizes = [1, 32], strides = [1, 1]} : vector<32x32xf32> to vector<1x32xf32>
    %198 = vector.extract_strided_slice %15 {offsets = [18, 0], sizes = [1, 32], strides = [1, 1]} : vector<32x32xf32> to vector<1x32xf32>
    %199 = vector.extract_strided_slice %19 {offsets = [18, 0], sizes = [1, 32], strides = [1, 1]} : vector<32x32xf32> to vector<1x32xf32>
    %200 = vector.extract_strided_slice %23 {offsets = [18, 0], sizes = [1, 32], strides = [1, 1]} : vector<32x32xf32> to vector<1x32xf32>
    %201 = vector.extract_strided_slice %27 {offsets = [18, 0], sizes = [1, 32], strides = [1, 1]} : vector<32x32xf32> to vector<1x32xf32>
    %202 = vector.extract_strided_slice %31 {offsets = [18, 0], sizes = [1, 32], strides = [1, 1]} : vector<32x32xf32> to vector<1x32xf32>
    %203 = tpu.concatenate %196, %197, %198, %199, %200, %201, %202 in 0 : vector<1x32xf32>, vector<1x32xf32>, vector<1x32xf32>, vector<1x32xf32>, vector<1x32xf32>, vector<1x32xf32>, vector<1x32xf32> -> vector<7x32xf32>
    %c0_41 = arith.constant 0 : index
    %c576 = arith.constant 576 : index
    %204 = vector.load %arg6[%c0_41, %c576] : memref<8x1024xf32, #tpu.memory_space<vmem>>, vector<7x32xf32>
    tpu.vector_store %arg6[%c0_41, %c576], %203 {strides = array<i32>} : memref<8x1024xf32, #tpu.memory_space<vmem>>, vector<7x32xf32>,
    %205 = vector.extract_strided_slice %7 {offsets = [19, 0], sizes = [1, 32], strides = [1, 1]} : vector<32x32xf32> to vector<1x32xf32>
    %206 = vector.extract_strided_slice %11 {offsets = [19, 0], sizes = [1, 32], strides = [1, 1]} : vector<32x32xf32> to vector<1x32xf32>
    %207 = vector.extract_strided_slice %15 {offsets = [19, 0], sizes = [1, 32], strides = [1, 1]} : vector<32x32xf32> to vector<1x32xf32>
    %208 = vector.extract_strided_slice %19 {offsets = [19, 0], sizes = [1, 32], strides = [1, 1]} : vector<32x32xf32> to vector<1x32xf32>
    %209 = vector.extract_strided_slice %23 {offsets = [19, 0], sizes = [1, 32], strides = [1, 1]} : vector<32x32xf32> to vector<1x32xf32>
    %210 = vector.extract_strided_slice %27 {offsets = [19, 0], sizes = [1, 32], strides = [1, 1]} : vector<32x32xf32> to vector<1x32xf32>
    %211 = vector.extract_strided_slice %31 {offsets = [19, 0], sizes = [1, 32], strides = [1, 1]} : vector<32x32xf32> to vector<1x32xf32>
    %212 = tpu.concatenate %205, %206, %207, %208, %209, %210, %211 in 0 : vector<1x32xf32>, vector<1x32xf32>, vector<1x32xf32>, vector<1x32xf32>, vector<1x32xf32>, vector<1x32xf32>, vector<1x32xf32> -> vector<7x32xf32>
    %c0_42 = arith.constant 0 : index
    %c608 = arith.constant 608 : index
    %213 = vector.load %arg6[%c0_42, %c608] : memref<8x1024xf32, #tpu.memory_space<vmem>>, vector<7x32xf32>
    tpu.vector_store %arg6[%c0_42, %c608], %212 {strides = array<i32>} : memref<8x1024xf32, #tpu.memory_space<vmem>>, vector<7x32xf32>,
    %214 = vector.extract_strided_slice %7 {offsets = [20, 0], sizes = [1, 32], strides = [1, 1]} : vector<32x32xf32> to vector<1x32xf32>
    %215 = vector.extract_strided_slice %11 {offsets = [20, 0], sizes = [1, 32], strides = [1, 1]} : vector<32x32xf32> to vector<1x32xf32>
    %216 = vector.extract_strided_slice %15 {offsets = [20, 0], sizes = [1, 32], strides = [1, 1]} : vector<32x32xf32> to vector<1x32xf32>
    %217 = vector.extract_strided_slice %19 {offsets = [20, 0], sizes = [1, 32], strides = [1, 1]} : vector<32x32xf32> to vector<1x32xf32>
    %218 = vector.extract_strided_slice %23 {offsets = [20, 0], sizes = [1, 32], strides = [1, 1]} : vector<32x32xf32> to vector<1x32xf32>
    %219 = vector.extract_strided_slice %27 {offsets = [20, 0], sizes = [1, 32], strides = [1, 1]} : vector<32x32xf32> to vector<1x32xf32>
    %220 = vector.extract_strided_slice %31 {offsets = [20, 0], sizes = [1, 32], strides = [1, 1]} : vector<32x32xf32> to vector<1x32xf32>
    %221 = tpu.concatenate %214, %215, %216, %217, %218, %219, %220 in 0 : vector<1x32xf32>, vector<1x32xf32>, vector<1x32xf32>, vector<1x32xf32>, vector<1x32xf32>, vector<1x32xf32>, vector<1x32xf32> -> vector<7x32xf32>
    %c0_43 = arith.constant 0 : index
    %c640 = arith.constant 640 : index
    %222 = vector.load %arg6[%c0_43, %c640] : memref<8x1024xf32, #tpu.memory_space<vmem>>, vector<7x32xf32>
    tpu.vector_store %arg6[%c0_43, %c640], %221 {strides = array<i32>} : memref<8x1024xf32, #tpu.memory_space<vmem>>, vector<7x32xf32>,
    %223 = vector.extract_strided_slice %7 {offsets = [21, 0], sizes = [1, 32], strides = [1, 1]} : vector<32x32xf32> to vector<1x32xf32>
    %224 = vector.extract_strided_slice %11 {offsets = [21, 0], sizes = [1, 32], strides = [1, 1]} : vector<32x32xf32> to vector<1x32xf32>
    %225 = vector.extract_strided_slice %15 {offsets = [21, 0], sizes = [1, 32], strides = [1, 1]} : vector<32x32xf32> to vector<1x32xf32>
    %226 = vector.extract_strided_slice %19 {offsets = [21, 0], sizes = [1, 32], strides = [1, 1]} : vector<32x32xf32> to vector<1x32xf32>
    %227 = vector.extract_strided_slice %23 {offsets = [21, 0], sizes = [1, 32], strides = [1, 1]} : vector<32x32xf32> to vector<1x32xf32>
    %228 = vector.extract_strided_slice %27 {offsets = [21, 0], sizes = [1, 32], strides = [1, 1]} : vector<32x32xf32> to vector<1x32xf32>
    %229 = vector.extract_strided_slice %31 {offsets = [21, 0], sizes = [1, 32], strides = [1, 1]} : vector<32x32xf32> to vector<1x32xf32>
    %230 = tpu.concatenate %223, %224, %225, %226, %227, %228, %229 in 0 : vector<1x32xf32>, vector<1x32xf32>, vector<1x32xf32>, vector<1x32xf32>, vector<1x32xf32>, vector<1x32xf32>, vector<1x32xf32> -> vector<7x32xf32>
    %c0_44 = arith.constant 0 : index
    %c672 = arith.constant 672 : index
    %231 = vector.load %arg6[%c0_44, %c672] : memref<8x1024xf32, #tpu.memory_space<vmem>>, vector<7x32xf32>
    tpu.vector_store %arg6[%c0_44, %c672], %230 {strides = array<i32>} : memref<8x1024xf32, #tpu.memory_space<vmem>>, vector<7x32xf32>,
    %232 = vector.extract_strided_slice %7 {offsets = [22, 0], sizes = [1, 32], strides = [1, 1]} : vector<32x32xf32> to vector<1x32xf32>
    %233 = vector.extract_strided_slice %11 {offsets = [22, 0], sizes = [1, 32], strides = [1, 1]} : vector<32x32xf32> to vector<1x32xf32>
    %234 = vector.extract_strided_slice %15 {offsets = [22, 0], sizes = [1, 32], strides = [1, 1]} : vector<32x32xf32> to vector<1x32xf32>
    %235 = vector.extract_strided_slice %19 {offsets = [22, 0], sizes = [1, 32], strides = [1, 1]} : vector<32x32xf32> to vector<1x32xf32>
    %236 = vector.extract_strided_slice %23 {offsets = [22, 0], sizes = [1, 32], strides = [1, 1]} : vector<32x32xf32> to vector<1x32xf32>
    %237 = vector.extract_strided_slice %27 {offsets = [22, 0], sizes = [1, 32], strides = [1, 1]} : vector<32x32xf32> to vector<1x32xf32>
    %238 = vector.extract_strided_slice %31 {offsets = [22, 0], sizes = [1, 32], strides = [1, 1]} : vector<32x32xf32> to vector<1x32xf32>
    %239 = tpu.concatenate %232, %233, %234, %235, %236, %237, %238 in 0 : vector<1x32xf32>, vector<1x32xf32>, vector<1x32xf32>, vector<1x32xf32>, vector<1x32xf32>, vector<1x32xf32>, vector<1x32xf32> -> vector<7x32xf32>
    %c0_45 = arith.constant 0 : index
    %c704 = arith.constant 704 : index
    %240 = vector.load %arg6[%c0_45, %c704] : memref<8x1024xf32, #tpu.memory_space<vmem>>, vector<7x32xf32>
    tpu.vector_store %arg6[%c0_45, %c704], %239 {strides = array<i32>} : memref<8x1024xf32, #tpu.memory_space<vmem>>, vector<7x32xf32>,
    %241 = vector.extract_strided_slice %7 {offsets = [23, 0], sizes = [1, 32], strides = [1, 1]} : vector<32x32xf32> to vector<1x32xf32>
    %242 = vector.extract_strided_slice %11 {offsets = [23, 0], sizes = [1, 32], strides = [1, 1]} : vector<32x32xf32> to vector<1x32xf32>
    %243 = vector.extract_strided_slice %15 {offsets = [23, 0], sizes = [1, 32], strides = [1, 1]} : vector<32x32xf32> to vector<1x32xf32>
    %244 = vector.extract_strided_slice %19 {offsets = [23, 0], sizes = [1, 32], strides = [1, 1]} : vector<32x32xf32> to vector<1x32xf32>
    %245 = vector.extract_strided_slice %23 {offsets = [23, 0], sizes = [1, 32], strides = [1, 1]} : vector<32x32xf32> to vector<1x32xf32>
    %246 = vector.extract_strided_slice %27 {offsets = [23, 0], sizes = [1, 32], strides = [1, 1]} : vector<32x32xf32> to vector<1x32xf32>
    %247 = vector.extract_strided_slice %31 {offsets = [23, 0], sizes = [1, 32], strides = [1, 1]} : vector<32x32xf32> to vector<1x32xf32>
    %248 = tpu.concatenate %241, %242, %243, %244, %245, %246, %247 in 0 : vector<1x32xf32>, vector<1x32xf32>, vector<1x32xf32>, vector<1x32xf32>, vector<1x32xf32>, vector<1x32xf32>, vector<1x32xf32> -> vector<7x32xf32>
    %c0_46 = arith.constant 0 : index
    %c736 = arith.constant 736 : index
    %249 = vector.load %arg6[%c0_46, %c736] : memref<8x1024xf32, #tpu.memory_space<vmem>>, vector<7x32xf32>
    tpu.vector_store %arg6[%c0_46, %c736], %248 {strides = array<i32>} : memref<8x1024xf32, #tpu.memory_space<vmem>>, vector<7x32xf32>,
    %250 = vector.extract_strided_slice %7 {offsets = [24, 0], sizes = [1, 32], strides = [1, 1]} : vector<32x32xf32> to vector<1x32xf32>
    %251 = vector.extract_strided_slice %11 {offsets = [24, 0], sizes = [1, 32], strides = [1, 1]} : vector<32x32xf32> to vector<1x32xf32>
    %252 = vector.extract_strided_slice %15 {offsets = [24, 0], sizes = [1, 32], strides = [1, 1]} : vector<32x32xf32> to vector<1x32xf32>
    %253 = vector.extract_strided_slice %19 {offsets = [24, 0], sizes = [1, 32], strides = [1, 1]} : vector<32x32xf32> to vector<1x32xf32>
    %254 = vector.extract_strided_slice %23 {offsets = [24, 0], sizes = [1, 32], strides = [1, 1]} : vector<32x32xf32> to vector<1x32xf32>
    %255 = vector.extract_strided_slice %27 {offsets = [24, 0], sizes = [1, 32], strides = [1, 1]} : vector<32x32xf32> to vector<1x32xf32>
    %256 = vector.extract_strided_slice %31 {offsets = [24, 0], sizes = [1, 32], strides = [1, 1]} : vector<32x32xf32> to vector<1x32xf32>
    %257 = tpu.concatenate %250, %251, %252, %253, %254, %255, %256 in 0 : vector<1x32xf32>, vector<1x32xf32>, vector<1x32xf32>, vector<1x32xf32>, vector<1x32xf32>, vector<1x32xf32>, vector<1x32xf32> -> vector<7x32xf32>
    %c0_47 = arith.constant 0 : index
    %c768 = arith.constant 768 : index
    %258 = vector.load %arg6[%c0_47, %c768] : memref<8x1024xf32, #tpu.memory_space<vmem>>, vector<7x32xf32>
    tpu.vector_store %arg6[%c0_47, %c768], %257 {strides = array<i32>} : memref<8x1024xf32, #tpu.memory_space<vmem>>, vector<7x32xf32>,
    %259 = vector.extract_strided_slice %7 {offsets = [25, 0], sizes = [1, 32], strides = [1, 1]} : vector<32x32xf32> to vector<1x32xf32>
    %260 = vector.extract_strided_slice %11 {offsets = [25, 0], sizes = [1, 32], strides = [1, 1]} : vector<32x32xf32> to vector<1x32xf32>
    %261 = vector.extract_strided_slice %15 {offsets = [25, 0], sizes = [1, 32], strides = [1, 1]} : vector<32x32xf32> to vector<1x32xf32>
    %262 = vector.extract_strided_slice %19 {offsets = [25, 0], sizes = [1, 32], strides = [1, 1]} : vector<32x32xf32> to vector<1x32xf32>
    %263 = vector.extract_strided_slice %23 {offsets = [25, 0], sizes = [1, 32], strides = [1, 1]} : vector<32x32xf32> to vector<1x32xf32>
    %264 = vector.extract_strided_slice %27 {offsets = [25, 0], sizes = [1, 32], strides = [1, 1]} : vector<32x32xf32> to vector<1x32xf32>
    %265 = vector.extract_strided_slice %31 {offsets = [25, 0], sizes = [1, 32], strides = [1, 1]} : vector<32x32xf32> to vector<1x32xf32>
    %266 = tpu.concatenate %259, %260, %261, %262, %263, %264, %265 in 0 : vector<1x32xf32>, vector<1x32xf32>, vector<1x32xf32>, vector<1x32xf32>, vector<1x32xf32>, vector<1x32xf32>, vector<1x32xf32> -> vector<7x32xf32>
    %c0_48 = arith.constant 0 : index
    %c800 = arith.constant 800 : index
    %267 = vector.load %arg6[%c0_48, %c800] : memref<8x1024xf32, #tpu.memory_space<vmem>>, vector<7x32xf32>
    tpu.vector_store %arg6[%c0_48, %c800], %266 {strides = array<i32>} : memref<8x1024xf32, #tpu.memory_space<vmem>>, vector<7x32xf32>,
    %268 = vector.extract_strided_slice %7 {offsets = [26, 0], sizes = [1, 32], strides = [1, 1]} : vector<32x32xf32> to vector<1x32xf32>
    %269 = vector.extract_strided_slice %11 {offsets = [26, 0], sizes = [1, 32], strides = [1, 1]} : vector<32x32xf32> to vector<1x32xf32>
    %270 = vector.extract_strided_slice %15 {offsets = [26, 0], sizes = [1, 32], strides = [1, 1]} : vector<32x32xf32> to vector<1x32xf32>
    %271 = vector.extract_strided_slice %19 {offsets = [26, 0], sizes = [1, 32], strides = [1, 1]} : vector<32x32xf32> to vector<1x32xf32>
    %272 = vector.extract_strided_slice %23 {offsets = [26, 0], sizes = [1, 32], strides = [1, 1]} : vector<32x32xf32> to vector<1x32xf32>
    %273 = vector.extract_strided_slice %27 {offsets = [26, 0], sizes = [1, 32], strides = [1, 1]} : vector<32x32xf32> to vector<1x32xf32>
    %274 = vector.extract_strided_slice %31 {offsets = [26, 0], sizes = [1, 32], strides = [1, 1]} : vector<32x32xf32> to vector<1x32xf32>
    %275 = tpu.concatenate %268, %269, %270, %271, %272, %273, %274 in 0 : vector<1x32xf32>, vector<1x32xf32>, vector<1x32xf32>, vector<1x32xf32>, vector<1x32xf32>, vector<1x32xf32>, vector<1x32xf32> -> vector<7x32xf32>
    %c0_49 = arith.constant 0 : index
    %c832 = arith.constant 832 : index
    %276 = vector.load %arg6[%c0_49, %c832] : memref<8x1024xf32, #tpu.memory_space<vmem>>, vector<7x32xf32>
    tpu.vector_store %arg6[%c0_49, %c832], %275 {strides = array<i32>} : memref<8x1024xf32, #tpu.memory_space<vmem>>, vector<7x32xf32>,
    %277 = vector.extract_strided_slice %7 {offsets = [27, 0], sizes = [1, 32], strides = [1, 1]} : vector<32x32xf32> to vector<1x32xf32>
    %278 = vector.extract_strided_slice %11 {offsets = [27, 0], sizes = [1, 32], strides = [1, 1]} : vector<32x32xf32> to vector<1x32xf32>
    %279 = vector.extract_strided_slice %15 {offsets = [27, 0], sizes = [1, 32], strides = [1, 1]} : vector<32x32xf32> to vector<1x32xf32>
    %280 = vector.extract_strided_slice %19 {offsets = [27, 0], sizes = [1, 32], strides = [1, 1]} : vector<32x32xf32> to vector<1x32xf32>
    %281 = vector.extract_strided_slice %23 {offsets = [27, 0], sizes = [1, 32], strides = [1, 1]} : vector<32x32xf32> to vector<1x32xf32>
    %282 = vector.extract_strided_slice %27 {offsets = [27, 0], sizes = [1, 32], strides = [1, 1]} : vector<32x32xf32> to vector<1x32xf32>
    %283 = vector.extract_strided_slice %31 {offsets = [27, 0], sizes = [1, 32], strides = [1, 1]} : vector<32x32xf32> to vector<1x32xf32>
    %284 = tpu.concatenate %277, %278, %279, %280, %281, %282, %283 in 0 : vector<1x32xf32>, vector<1x32xf32>, vector<1x32xf32>, vector<1x32xf32>, vector<1x32xf32>, vector<1x32xf32>, vector<1x32xf32> -> vector<7x32xf32>
    %c0_50 = arith.constant 0 : index
    %c864 = arith.constant 864 : index
    %285 = vector.load %arg6[%c0_50, %c864] : memref<8x1024xf32, #tpu.memory_space<vmem>>, vector<7x32xf32>
    tpu.vector_store %arg6[%c0_50, %c864], %284 {strides = array<i32>} : memref<8x1024xf32, #tpu.memory_space<vmem>>, vector<7x32xf32>,
    %286 = vector.extract_strided_slice %7 {offsets = [28, 0], sizes = [1, 32], strides = [1, 1]} : vector<32x32xf32> to vector<1x32xf32>
    %287 = vector.extract_strided_slice %11 {offsets = [28, 0], sizes = [1, 32], strides = [1, 1]} : vector<32x32xf32> to vector<1x32xf32>
    %288 = vector.extract_strided_slice %15 {offsets = [28, 0], sizes = [1, 32], strides = [1, 1]} : vector<32x32xf32> to vector<1x32xf32>
    %289 = vector.extract_strided_slice %19 {offsets = [28, 0], sizes = [1, 32], strides = [1, 1]} : vector<32x32xf32> to vector<1x32xf32>
    %290 = vector.extract_strided_slice %23 {offsets = [28, 0], sizes = [1, 32], strides = [1, 1]} : vector<32x32xf32> to vector<1x32xf32>
    %291 = vector.extract_strided_slice %27 {offsets = [28, 0], sizes = [1, 32], strides = [1, 1]} : vector<32x32xf32> to vector<1x32xf32>
    %292 = vector.extract_strided_slice %31 {offsets = [28, 0], sizes = [1, 32], strides = [1, 1]} : vector<32x32xf32> to vector<1x32xf32>
    %293 = tpu.concatenate %286, %287, %288, %289, %290, %291, %292 in 0 : vector<1x32xf32>, vector<1x32xf32>, vector<1x32xf32>, vector<1x32xf32>, vector<1x32xf32>, vector<1x32xf32>, vector<1x32xf32> -> vector<7x32xf32>
    %c0_51 = arith.constant 0 : index
    %c896 = arith.constant 896 : index
    %294 = vector.load %arg6[%c0_51, %c896] : memref<8x1024xf32, #tpu.memory_space<vmem>>, vector<7x32xf32>
    tpu.vector_store %arg6[%c0_51, %c896], %293 {strides = array<i32>} : memref<8x1024xf32, #tpu.memory_space<vmem>>, vector<7x32xf32>,
    %295 = vector.extract_strided_slice %7 {offsets = [29, 0], sizes = [1, 32], strides = [1, 1]} : vector<32x32xf32> to vector<1x32xf32>
    %296 = vector.extract_strided_slice %11 {offsets = [29, 0], sizes = [1, 32], strides = [1, 1]} : vector<32x32xf32> to vector<1x32xf32>
    %297 = vector.extract_strided_slice %15 {offsets = [29, 0], sizes = [1, 32], strides = [1, 1]} : vector<32x32xf32> to vector<1x32xf32>
    %298 = vector.extract_strided_slice %19 {offsets = [29, 0], sizes = [1, 32], strides = [1, 1]} : vector<32x32xf32> to vector<1x32xf32>
    %299 = vector.extract_strided_slice %23 {offsets = [29, 0], sizes = [1, 32], strides = [1, 1]} : vector<32x32xf32> to vector<1x32xf32>
    %300 = vector.extract_strided_slice %27 {offsets = [29, 0], sizes = [1, 32], strides = [1, 1]} : vector<32x32xf32> to vector<1x32xf32>
    %301 = vector.extract_strided_slice %31 {offsets = [29, 0], sizes = [1, 32], strides = [1, 1]} : vector<32x32xf32> to vector<1x32xf32>
    %302 = tpu.concatenate %295, %296, %297, %298, %299, %300, %301 in 0 : vector<1x32xf32>, vector<1x32xf32>, vector<1x32xf32>, vector<1x32xf32>, vector<1x32xf32>, vector<1x32xf32>, vector<1x32xf32> -> vector<7x32xf32>
    %c0_52 = arith.constant 0 : index
    %c928 = arith.constant 928 : index
    %303 = vector.load %arg6[%c0_52, %c928] : memref<8x1024xf32, #tpu.memory_space<vmem>>, vector<7x32xf32>
    tpu.vector_store %arg6[%c0_52, %c928], %302 {strides = array<i32>} : memref<8x1024xf32, #tpu.memory_space<vmem>>, vector<7x32xf32>,
    %304 = vector.extract_strided_slice %7 {offsets = [30, 0], sizes = [1, 32], strides = [1, 1]} : vector<32x32xf32> to vector<1x32xf32>
    %305 = vector.extract_strided_slice %11 {offsets = [30, 0], sizes = [1, 32], strides = [1, 1]} : vector<32x32xf32> to vector<1x32xf32>
    %306 = vector.extract_strided_slice %15 {offsets = [30, 0], sizes = [1, 32], strides = [1, 1]} : vector<32x32xf32> to vector<1x32xf32>
    %307 = vector.extract_strided_slice %19 {offsets = [30, 0], sizes = [1, 32], strides = [1, 1]} : vector<32x32xf32> to vector<1x32xf32>
    %308 = vector.extract_strided_slice %23 {offsets = [30, 0], sizes = [1, 32], strides = [1, 1]} : vector<32x32xf32> to vector<1x32xf32>
    %309 = vector.extract_strided_slice %27 {offsets = [30, 0], sizes = [1, 32], strides = [1, 1]} : vector<32x32xf32> to vector<1x32xf32>
    %310 = vector.extract_strided_slice %31 {offsets = [30, 0], sizes = [1, 32], strides = [1, 1]} : vector<32x32xf32> to vector<1x32xf32>
    %311 = tpu.concatenate %304, %305, %306, %307, %308, %309, %310 in 0 : vector<1x32xf32>, vector<1x32xf32>, vector<1x32xf32>, vector<1x32xf32>, vector<1x32xf32>, vector<1x32xf32>, vector<1x32xf32> -> vector<7x32xf32>
    %c0_53 = arith.constant 0 : index
    %c960 = arith.constant 960 : index
    %312 = vector.load %arg6[%c0_53, %c960] : memref<8x1024xf32, #tpu.memory_space<vmem>>, vector<7x32xf32>
    tpu.vector_store %arg6[%c0_53, %c960], %311 {strides = array<i32>} : memref<8x1024xf32, #tpu.memory_space<vmem>>, vector<7x32xf32>,
    %313 = vector.extract_strided_slice %7 {offsets = [31, 0], sizes = [1, 32], strides = [1, 1]} : vector<32x32xf32> to vector<1x32xf32>
    %314 = vector.extract_strided_slice %11 {offsets = [31, 0], sizes = [1, 32], strides = [1, 1]} : vector<32x32xf32> to vector<1x32xf32>
    %315 = vector.extract_strided_slice %15 {offsets = [31, 0], sizes = [1, 32], strides = [1, 1]} : vector<32x32xf32> to vector<1x32xf32>
    %316 = vector.extract_strided_slice %19 {offsets = [31, 0], sizes = [1, 32], strides = [1, 1]} : vector<32x32xf32> to vector<1x32xf32>
    %317 = vector.extract_strided_slice %23 {offsets = [31, 0], sizes = [1, 32], strides = [1, 1]} : vector<32x32xf32> to vector<1x32xf32>
    %318 = vector.extract_strided_slice %27 {offsets = [31, 0], sizes = [1, 32], strides = [1, 1]} : vector<32x32xf32> to vector<1x32xf32>
    %319 = vector.extract_strided_slice %31 {offsets = [31, 0], sizes = [1, 32], strides = [1, 1]} : vector<32x32xf32> to vector<1x32xf32>
    %320 = tpu.concatenate %313, %314, %315, %316, %317, %318, %319 in 0 : vector<1x32xf32>, vector<1x32xf32>, vector<1x32xf32>, vector<1x32xf32>, vector<1x32xf32>, vector<1x32xf32>, vector<1x32xf32> -> vector<7x32xf32>
    %c0_54 = arith.constant 0 : index
    %c992 = arith.constant 992 : index
    %321 = vector.load %arg6[%c0_54, %c992] : memref<8x1024xf32, #tpu.memory_space<vmem>>, vector<7x32xf32>
    tpu.vector_store %arg6[%c0_54, %c992], %320 {strides = array<i32>} : memref<8x1024xf32, #tpu.memory_space<vmem>>, vector<7x32xf32>,
    %c0_55 = arith.constant 0 : index
    %c0_56 = arith.constant 0 : index
    %322 = vector.load %arg2[%c0_55, %c0_56] : memref<64x8xf32, #tpu.memory_space<vmem>>, vector<64x8xf32>
    %c0_57 = arith.constant 0 : index
    %c0_58 = arith.constant 0 : index
    %323 = vector.load %arg6[%c0_57, %c0_58] : memref<8x1024xf32, #tpu.memory_space<vmem>>, vector<8x1024xf32>
    %cst_59 = arith.constant dense<0.000000e+00> : vector<64x1024xf32>
    %324 = tpu.matmul %322, %323, %cst_59 {dimension_numbers = #tpu.dot_dimension_numbers<[1], [0], [0], [1], [0, 0, 1, 1], [], []>} : vector<64x8xf32>, vector<8x1024xf32>, vector<64x1024xf32> -> vector<64x1024xf32>
    %c0_60 = arith.constant 0 : index
    %c0_61 = arith.constant 0 : index
    %c0_62 = arith.constant 0 : index
    %325 = vector.load %arg5[%c0_60, %c0_61, %c0_62] : memref<1x64x1024xf32, #tpu.memory_space<vmem>>, vector<1x64x1024xf32>
    %326 = vector.shape_cast %325 : vector<1x64x1024xf32> to vector<64x1024xf32>
    %327 = vector.shape_cast %324 : vector<64x1024xf32> to vector<1x64x1024xf32>
    tpu.vector_store %arg5[%c0_60, %c0_61, %c0_62], %327 {strides = array<i32>} : memref<1x64x1024xf32, #tpu.memory_space<vmem>>, vector<1x64x1024xf32>,
    return
  }
  func.func @transform_0(%arg0: i32) -> (i32, i32, i32, i32) {
    %c0_i32 = arith.constant 0 : i32
    %c0_i32_0 = arith.constant 0 : i32
    %c0_i32_1 = arith.constant 0 : i32
    %c0_i32_2 = arith.constant 0 : i32
    return %arg0, %c0_i32, %c0_i32_0, %c0_i32_1 : i32, i32, i32, i32
  }
  func.func @transform_1(%arg0: i32) -> (i32, i32) {
    %c0_i32 = arith.constant 0 : i32
    %c0_i32_0 = arith.constant 0 : i32
    %c0_i32_1 = arith.constant 0 : i32
    return %c0_i32, %c0_i32_0 : i32, i32
  }
  func.func @transform_2(%arg0: i32) -> (i32, i32) {
    %c0_i32 = arith.constant 0 : i32
    %c0_i32_0 = arith.constant 0 : i32
    %c0_i32_1 = arith.constant 0 : i32
    return %c0_i32, %c0_i32_0 : i32, i32
  }
  func.func @transform_3(%arg0: i32) -> (i32, i32) {
    %c0_i32 = arith.constant 0 : i32
    %c0_i32_0 = arith.constant 0 : i32
    %c0_i32_1 = arith.constant 0 : i32
    return %c0_i32, %c0_i32_0 : i32, i32
  }
  func.func @transform_4(%arg0: i32) -> (i32, i32, i32) {
    %c0_i32 = arith.constant 0 : i32
    %c0_i32_0 = arith.constant 0 : i32
    %c0_i32_1 = arith.constant 0 : i32
    return %arg0, %c0_i32, %c0_i32_0 : i32, i32, i32
  }
}

</mosaic_0001>

<bundles_post_ra>
// kernel: tpu_custom_call.1
= control target key start
LH: loop header
LB: loop body
LE: loop exit
PB: predicated region body
PF: predicated region fallthrough
CT: control target
= control target key end

     0   :  { %9 = vsyncpa [#allocation4], 0  ;;  %s3823_s0 = inlined_call_operand.hbm [shape: f32[2,7,64,64], index: 0, kind: input, shape index: {}]   ;;  %s3824_s1 = inlined_call_operand.vmem [shape: f32[64,8], index: 1, kind: input, shape index: {}]   ;;  %s3825_s2 = inlined_call_operand.vmem [shape: f32[32,64], index: 2, kind: input, shape index: {}]   ;;  %s3826_s3 = inlined_call_operand.vmem [shape: f32[64,32], index: 3, kind: input, shape index: {}]   ;;  %s3827_s4 = inlined_call_operand.hbm [shape: f32[2,64,1024], index: 4, kind: output, shape index: {}]  }
   0x1   :  { %11 = vsyncpa [#allocation4 + $0x1], 0 }
   0x2   :  { %12 = vsyncpa [#allocation5], 0 }
   0x3   :  { %14 = vsyncpa [#allocation5 + $0x1], 0  ;;  %s2595_s15 = smov 0   ;;  %s2597_s16 = smov 0  }
   0x4   :  { %s2599_s17 = smov 0   ;;  %s2601_s18 = smov 0  }
   0x5 LB: > { %s2616_s19 = sadd.s32 4294967295, %s2561_s18   ;;  %s2232_s20 = sadd.s32 4294967294, %s2561_s18   ;;  %s2561_s18 = sphi %s2601_s18, %s3849_s18   ;;  %s2557_s17 = sphi %s2599_s17, %s3848_s17   ;;  %s2553_s16 = sphi %s2597_s16, %s3847_s16   ;;  %s2549_s15 = sphi %s2595_s15, %s3846_s15  }
   0x6   : > { %s2620_s21 = sadd.s32 1, %s2561_s18   ;;  %s27_s22 = sadd.s32 1, %s2557_s17 }
   0x7   : > { %s24_s23 = ssub.s32 %s2561_s18, %s2620_s21  ;;  %p34_p0 = scmp.ne.s32.totalorder %s2557_s17, %s2553_s16 }
   0x8   : > { %p25_p1 = scmp.eq.s32.totalorder %s24_s23, 0  ;;  %p35_p2 = scmp.eq.s32.totalorder %s2561_s18, 0 }
   0x9   : > { %p40_p3 = scmp.ne.s32.totalorder %s2553_s16, %s2549_s15  ;;  %p41_p4 = scmp.eq.s32.totalorder %s2616_s19, 0 }
   0xa   : > { %s2632_s24 = scalar_select %p25_p1, %s2557_s17, %s27_s22  }
   0xb   : > { %p36_p5 = por %p35_p2, %p34_p0  ;;  %p2634_p6 = por %p41_p4, %p40_p3 }
   0xc   : > { %p127_p7 = scmp.eq.s32.totalorder %s2616_s19, 1  ;;  %p133_p8 = scmp.eq.s32.totalorder %s2232_s20, 1 }
   0xd   : > { %p2234_p9 = scmp.ge.s32.totalorder %s2561_s18, 2  ;;  %p2424_p10 = scmp.lt.s32.totalorder %s2561_s18, 2 }
   0xe   : > { %p2641_p11 = por %p127_p7, %p34_p0  ;;  %p2645_p12 = por %p133_p8, %p40_p3 }
   0xf   : > { %s162_s28 = sand.u32 1, %s2557_s17   ;;  %s2410_s29 = smul.u32 448, %s2561_s18 }
  0x10   : > { %s2409_s30 = smul.u32 448, %s162_s28  ;;  %p2654_p13 = pnand %p2424_p10, %p36_p5 }
  0x11   : > { %s171_s7 = scalar_lea.hbm %s3823_s0, %s2410_s29  ;;  %s163_s12 = scalar_lea.sflag [#allocation4], %s162_s28 }
  0x12   : > { %s172_s9 = sshll.u32 %s171_s7, 4  ;;  %s166_s10 = scalar_lea.vmem [#allocation3], %s2409_s30  ;;  %s173_s9 = int_to_ptr.hbm [resolvable:$true] %s172_s9 }
  0x13   : > { %s174_s11 = sshll.u32 %s166_s10, 4  ;;  %s2465_s13 = sshra.s32 %s173_s9, 4  ;;  %s175_s11 = int_to_ptr.vmem [resolvable:$true] %s174_s11  ;;  %s2466_s13 = int_to_ptr.hbm [resolvable:$true] %s2465_s13 }
  0x14   : > { %s2467_s14 = scalar_lea.hbm %s2466_s13, 448  ;;  %p2469_p1 = pneg %p2654_p13 }
  0x15   : > { %p2468_p0 = scmp.ne.s32.totalorder %s2466_s13, %s2467_s14  ;;  %s2472_s23 = scalar_lea.hbm %s3823_s0, 896 }
  0x16   : > { %p2473_p4 = scmp.lt.s32.totalorder %s2466_s13, %s3823_s0  ;;  %p2474_p5 = scmp.lt.s32.totalorder %s2472_s23, %s2467_s14 }
  0x17   : > { %p2470_p2 = pnand %p2469_p1, %p2468_p0 }
  0x18   : > { %p2475_p7 = por %p2474_p5, %p2473_p4 }
  0x19   : > { %p2471_p3 = pneg %p2470_p2 }
  0x1b   : > { %p2476_p8 = pnand %p2475_p7, %p2471_p3 }
  0x1d   : > { %2479 = shalt.err (!%p2476_p8)
}
  0x1e   : > { %s2563_s28 = smov 128   ;;  %s2564_s30 = smov 8  }
  0x1f   : > { %2419 = dma.hbm_to_vmem [thread:$0]  (!%p2654_p13), %s173_s9, 7168, %s175_s11, %s163_s12, %s2563_s28, %s2563_s28, %s2564_s30  }
  0x20   : > { %p2236_p10 = scmp.ge.s32.totalorder %s2561_s18, 1  ;;  %p182_p0 = scmp.lt.s32.totalorder %s2561_s18, 3 }
  0x22   : > { %p183_p1 = pnand %p2236_p10, %p182_p0 }
  0x23   : > { %s2671_s6 = sand.u32 (!%p183_p1), 1, %s2553_s16  }
  0x24   : > { %186 = sbr.rel (%p183_p1) target bundleno = 1476 (0x5c4), region = 36  ;;  %s189_s10 = scalar_lea.sflag (!%p183_p1), [#allocation4], %s2671_s6 }
  0x25   : > { %s2411_s7 = smul.u32 (!%p183_p1), 448, %s2671_s6 }
  0x27   : > { %s2675_s13 = scalar_lea.vmem (!%p183_p1), [#allocation3], %s2411_s7 }
  0x29   : > { %2540 = dma.done.wait (%p2634_p6), %s189_s10, 7168  }
  0x2a   : > { %2542 = vsyncadd (%p2634_p6), %s189_s10, 4294960128  ;;  %v2684_v0 = vld [vmem:[%s3826_s3 + $0x38] sm:$0xff]  ;;  %v2689_v1 = vld [vmem:[%s3826_s3 + $0x30] sm:$0xff]  ;;  %vm286_vm0 = vcmask 523264   ;;  %vm978_vm1 = vcmask 1040384   ;;  %vm980_vm2 = vcmask 1041408  }
  0x2b   : > { %319 = vmatpush.msra.mxu0 %v2684_v0  ;;  %425 = vmatpush.msra.mxu2 %v2684_v0  ;;  %v2696_v2 = vld [vmem:[%s3826_s3 + $0x28] sm:$0xff]  ;;  %v2703_v3 = vld [vmem:[%s3826_s3 + $0x20] sm:$0xff]  ;;  %v2710_v4 = vld [vmem:[%s3826_s3 + $0x18] sm:$0xff]  ;;  %vm982_vm3 = vcmask 1042432   ;;  %vm984_vm4 = vcmask 1043456   ;;  %vm986_vm5 = vcmask 1044480  }
  0x2c   : > { %v2717_v5 = vld [vmem:[%s3826_s3 + $0x10] sm:$0xff]  ;;  %v2724_v6 = vld [vmem:[%s3826_s3 + $0x8] sm:$0xff]  ;;  %v2731_v7 = vld [vmem:[%s3826_s3] sm:$0xff]  ;;  %vm988_vm6 = vcmask 1045504   ;;  %vm990_vm7 = vcmask 260096   ;;  %s2566_s29 = smov 96  }
  0x2d   : > { %320 = vmatpush.msra.mxu0 %v2689_v1  ;;  %426 = vmatpush.msra.mxu2 %v2689_v1  ;;  %v230_v8 = vld [vmem:[%s2675_s13] sm:$0xff]  ;;  %v231_v10 = vld [vmem:[%s2675_s13 + $0x8] sm:$0xff]  ;;  %v232_v12 = vld [vmem:[%s2675_s13 + $0x10] sm:$0xff]  ;;  %s2567_s5 = smov 32   ;;  %vm1015_vm8 = vcmask 522496   ;;  %vm1039_vm9 = vcmask 784896  }
  0x2e   : > { %v238_v9 = vld [vmem:[%s2675_s13 + $0x40] sm:$0xff]  ;;  %v239_v11 = vld [vmem:[%s2675_s13 + $0x48] sm:$0xff]  ;;  %v240_v13 = vld [vmem:[%s2675_s13 + $0x50] sm:$0xff]  ;;  %vm1063_vm10 = vcmask 1047296   ;;  %vm1726_vm11 = vcmask 64512   ;;  %s2237_s30 = sshll.u32 %s2671_s6, 9 }
  0x2f   : > { %321 = vmatpush.msra.mxu0 %v2696_v2  ;;  %427 = vmatpush.msra.mxu2 %v2696_v2  ;;  %v233_v14 = vld [vmem:[%s2675_s13 + $0x18] sm:$0xff]  ;;  %v234_v16 = vld [vmem:[%s2675_s13 + $0x20] sm:$0xff]  ;;  %v235_v18 = vld [vmem:[%s2675_s13 + $0x28] sm:$0xff]  ;;  %s3722_s7 = scalar_lea.vmem [#allocation6], %s2237_s30  ;;  %s2391_s10 = sshll.u32 %s2616_s19, 9 }
  0x30   : > { %v241_v15 = vld [vmem:[%s2675_s13 + $0x58] sm:$0xff]  ;;  %v242_v17 = vld [vmem:[%s2675_s13 + $0x60] sm:$0xff]  ;;  %v243_v19 = vld [vmem:[%s2675_s13 + $0x68] sm:$0xff]  ;;  %s2155_s11 = scalar_lea.hbm %s3827_s4, %s2391_s10  ;;  %s2156_s12 = sshll.u32 %s3722_s7, 4  ;;  %s2157_s12 = int_to_ptr.vmem [resolvable:$true] %s2156_s12 }
  0x31   : > { %322 = vmatpush.msra.mxu0 %v2703_v3  ;;  %428 = vmatpush.msra.mxu2 %v2703_v3  ;;  %v236_v20 = vld [vmem:[%s2675_s13 + $0x30] sm:$0xff]  ;;  %v237_v22 = vld [vmem:[%s2675_s13 + $0x38] sm:$0xff]  ;;  %v2772_v40 = vld [vmem:[%s3825_s2] sm:$0xff]  ;;  %s2158_s14 = sshll.u32 %s2155_s11, 4  ;;  %s2144_s19 = scalar_lea.sflag [#allocation5], %s2671_s6  ;;  %s2159_s14 = int_to_ptr.hbm [resolvable:$true] %s2158_s14 }
  0x32   : > { %v244_v21 = vld [vmem:[%s2675_s13 + $0x70] sm:$0xff]  ;;  %v245_v23 = vld [vmem:[%s2675_s13 + $0x78] sm:$0xff]  ;;  %v2791_v42 = vld [vmem:[%s3825_s2 + $0x8] sm:$0xff]  ;;  %s2509_s20 = sshra.s32 %s2159_s14, 4  ;;  %s2510_s20 = int_to_ptr.hbm [resolvable:$true] %s2509_s20 }
  0x33   : > { %323 = vmatpush.msra.mxu0 %v2710_v4  ;;  %429 = vmatpush.msra.mxu2 %v2710_v4  ;;  %v2777_v41 = vld [vmem:[%s3825_s2 + $0x10] sm:$0xff]  ;;  %v2797_v43 = vld [vmem:[%s3825_s2 + $0x18] sm:$0xff]  ;;  %v254_v44 = vld [vmem:[%s2675_s13 + $0xc0] sm:$0xff]  ;;  %s2511_s25 = scalar_lea.hbm %s2510_s20, 512  ;;  %p2516_p3 = scmp.lt.s32.totalorder %s2510_s20, %s3827_s4 }
  0x34   : > { %v246_v45 = vld [vmem:[%s2675_s13 + $0x80] sm:$0xff]  ;;  %v255_v46 = vld [vmem:[%s2675_s13 + $0xc8] sm:$0xff]  ;;  %v256_v48 = vld [vmem:[%s2675_s13 + $0xd0] sm:$0xff]  ;;  %p2512_p6 = scmp.ne.s32.totalorder %s2510_s20, %s2511_s25 }
  0x35   : > { %324 = vmatpush.msra.mxu0 %v2717_v5  ;;  %430 = vmatpush.msra.mxu2 %v2717_v5  ;;  %v247_v47 = vld [vmem:[%s2675_s13 + $0x88] sm:$0xff]  ;;  %v248_v49 = vld [vmem:[%s2675_s13 + $0x90] sm:$0xff]  ;;  %v257_v50 = vld [vmem:[%s2675_s13 + $0xd8] sm:$0xff] }
  0x36   : > { %v249_v51 = vld [vmem:[%s2675_s13 + $0x98] sm:$0xff]  ;;  %v258_v52 = vld [vmem:[%s2675_s13 + $0xe0] sm:$0xff]  ;;  %v259_v54 = vld [vmem:[%s2675_s13 + $0xe8] sm:$0xff]  ;;  %p2513_p13 = pnand %p2512_p6, %p2641_p11 }
  0x37   : > { %325 = vmatpush.msra.mxu0 %v2724_v6  ;;  %431 = vmatpush.msra.mxu2 %v2724_v6  ;;  %v250_v53 = vld [vmem:[%s2675_s13 + $0xa0] sm:$0xff]  ;;  %v251_v55 = vld [vmem:[%s2675_s13 + $0xa8] sm:$0xff]  ;;  %v260_v56 = vld [vmem:[%s2675_s13 + $0xf0] sm:$0xff] }
  0x38   : > { %v252_v57 = vld [vmem:[%s2675_s13 + $0xb0] sm:$0xff]  ;;  %v261_v58 = vld [vmem:[%s2675_s13 + $0xf8] sm:$0xff]  ;;  %p2514_p2 = pneg %p2513_p13 }
  0x39   : > { %326 = vmatpush.msra.mxu0 %v2731_v7  ;;  %432 = vmatpush.msra.mxu2 %v2731_v7  ;;  %v253_v59 = vld [vmem:[%s2675_s13 + $0xb8] sm:$0xff] }
  0x3a   : > { %2238 = vmatmul.msk.f32.vlgmr.msra.gmra.mxu0 %vm286_vm0, %v230_v8  ;;  %2250 = vmatmul.msk.f32.vlgmr.msra.gmra.mxu2 %vm286_vm0, %v238_v9 }
  0x42   : > { %2239 = vmatmul.msk.f32.gmra.mxu0 %vm286_vm0, %v231_v10  ;;  %2251 = vmatmul.msk.f32.gmra.mxu2 %vm286_vm0, %v239_v11 }
  0x4a   : > { %2240 = vmatmul.msk.f32.gmra.mxu0 %vm286_vm0, %v232_v12  ;;  %2252 = vmatmul.msk.f32.gmra.mxu2 %vm286_vm0, %v240_v13 }
  0x52   : > { %2241 = vmatmul.msk.f32.gmra.mxu0 %vm286_vm0, %v233_v14  ;;  %2253 = vmatmul.msk.f32.gmra.mxu2 %vm286_vm0, %v241_v15 }
  0x5a   : > { %2242 = vmatmul.msk.f32.gmra.mxu0 %vm286_vm0, %v234_v16  ;;  %2254 = vmatmul.msk.f32.gmra.mxu2 %vm286_vm0, %v242_v17 }
  0x62   : > { %2243 = vmatmul.msk.f32.gmra.mxu0 %vm286_vm0, %v235_v18  ;;  %2255 = vmatmul.msk.f32.gmra.mxu2 %vm286_vm0, %v243_v19 }
  0x6a   : > { %2244 = vmatmul.msk.f32.gmra.mxu0 %vm286_vm0, %v236_v20  ;;  %2256 = vmatmul.msk.f32.gmra.mxu2 %vm286_vm0, %v244_v21 }
  0x72   : > { %2245 = vmatmul.msk.f32.gmra.mxu0 %vm286_vm0, %v237_v22  ;;  %2257 = vmatmul.msk.f32.gmra.mxu2 %vm286_vm0, %v245_v23 }
  0xb7   : > { %v328_v24 = vpop.f32.mrf.mxu0 }
  0xbd   : > { %v434_v25 = vpop.f32.mrf.mxu2 }
  0xbf   : > { %v331_v26 = vpop.f32.mrf.mxu0 }
  0xc5   : > { %v437_v27 = vpop.f32.mrf.mxu2 }
  0xc7   : > { %v334_v28 = vpop.f32.mrf.mxu0 }
  0xcd   : > { %v440_v29 = vpop.f32.mrf.mxu2 }
  0xcf   : > { %v337_v30 = vpop.f32.mrf.mxu0 }
  0xd5   : > { %v443_v31 = vpop.f32.mrf.mxu2 }
  0xd7   : > { %v340_v32 = vpop.f32.mrf.mxu0 }
  0xdd   : > { %v446_v33 = vpop.f32.mrf.mxu2 }
  0xdf   : > { %v343_v34 = vpop.f32.mrf.mxu0 }
  0xe5   : > { %v449_v35 = vpop.f32.mrf.mxu2 }
  0xe7   : > { %v346_v36 = vpop.f32.mrf.mxu0 }
  0xed   : > { %v452_v37 = vpop.f32.mrf.mxu2 }
  0xef   : > { %v349_v38 = vpop.f32.mrf.mxu0 }
  0xf0   : > { %372 = vmatpush.msrb.mxu0 %v349_v38  ;;  %2392 = vmatpush.msra.mxu1 %v349_v38  ;;  %v277_v38 = vld [vmem:[%s2675_s13 + $0x178] sm:$0xff] }
  0xf2   : > { %373 = vmatpush.msrb.mxu0 %v346_v36  ;;  %2393 = vmatpush.msra.mxu1 %v346_v36  ;;  %v276_v36 = vld [vmem:[%s2675_s13 + $0x170] sm:$0xff] }
  0xf4   : > { %374 = vmatpush.msrb.mxu0 %v343_v34  ;;  %2394 = vmatpush.msra.mxu1 %v343_v34  ;;  %v275_v34 = vld [vmem:[%s2675_s13 + $0x168] sm:$0xff] }
  0xf5   : > { %v455_v39 = vpop.f32.mrf.mxu2 }
  0xf6   : > { %375 = vmatpush.msrb.mxu0 %v340_v32  ;;  %2395 = vmatpush.msra.mxu1 %v340_v32  ;;  %v274_v32 = vld [vmem:[%s2675_s13 + $0x160] sm:$0xff] }
  0xf7   : > { %466 = vmatpush.msra.mxu3 %v455_v39  ;;  %v269_v39 = vld [vmem:[%s2675_s13 + $0x138] sm:$0xff] }
  0xf8   : > { %376 = vmatpush.msrb.mxu0 %v337_v30  ;;  %2396 = vmatpush.msra.mxu1 %v337_v30  ;;  %v273_v30 = vld [vmem:[%s2675_s13 + $0x158] sm:$0xff] }
  0xf9   : > { %467 = vmatpush.msra.mxu3 %v452_v37  ;;  %v268_v37 = vld [vmem:[%s2675_s13 + $0x130] sm:$0xff] }
  0xfa   : > { %377 = vmatpush.msrb.mxu0 %v334_v28  ;;  %2397 = vmatpush.msra.mxu1 %v334_v28  ;;  %v272_v28 = vld [vmem:[%s2675_s13 + $0x150] sm:$0xff] }
  0xfb   : > { %468 = vmatpush.msra.mxu3 %v449_v35  ;;  %v267_v35 = vld [vmem:[%s2675_s13 + $0x128] sm:$0xff] }
  0xfc   : > { %378 = vmatpush.msrb.mxu0 %v331_v26  ;;  %2398 = vmatpush.msra.mxu1 %v331_v26  ;;  %v271_v26 = vld [vmem:[%s2675_s13 + $0x148] sm:$0xff] }
  0xfd   : > { %469 = vmatpush.msra.mxu3 %v446_v33  ;;  %v266_v33 = vld [vmem:[%s2675_s13 + $0x120] sm:$0xff] }
  0xfe   : > { %379 = vmatpush.msrb.mxu0 %v328_v24  ;;  %2399 = vmatpush.msra.mxu1 %v328_v24  ;;  %v270_v24 = vld [vmem:[%s2675_s13 + $0x140] sm:$0xff] }
  0xff   : > { %470 = vmatpush.msra.mxu3 %v443_v31  ;;  %2246 = vmatmul.msk.f32.vlgmr.msrb.gmra.mxu0 %vm286_vm0, %v2772_v40  ;;  %v265_v31 = vld [vmem:[%s2675_s13 + $0x118] sm:$0xff] }
 0x100   : > { %2248 = vmatmul.msk.f32.vlgmr.msra.gmra.mxu1 %vm286_vm0, %v2777_v41  ;;  %613 = vmatpush.msra.mxu0 %v2684_v0 }
 0x101   : > { %471 = vmatpush.msra.mxu3 %v440_v29  ;;  %519 = vmatpush.msrb.mxu1 %v2684_v0  ;;  %v264_v29 = vld [vmem:[%s2675_s13 + $0x110] sm:$0xff] }
 0x102   : > { %614 = vmatpush.msra.mxu0 %v2689_v1 }
 0x103   : > { %472 = vmatpush.msra.mxu3 %v437_v27  ;;  %520 = vmatpush.msrb.mxu1 %v2689_v1  ;;  %v263_v27 = vld [vmem:[%s2675_s13 + $0x108] sm:$0xff] }
 0x104   : > { %615 = vmatpush.msra.mxu0 %v2696_v2 }
 0x105   : > { %473 = vmatpush.msra.mxu3 %v434_v25  ;;  %521 = vmatpush.msrb.mxu1 %v2696_v2  ;;  %v262_v25 = vld [vmem:[%s2675_s13 + $0x100] sm:$0xff] }
 0x106   : > { %2258 = vmatmul.msk.f32.vlgmr.msra.gmra.mxu3 %vm286_vm0, %v2772_v40  ;;  %616 = vmatpush.msra.mxu0 %v2703_v3 }
 0x107   : > { %522 = vmatpush.msrb.mxu1 %v2703_v3  ;;  %2247 = vmatmul.msk.f32.gmra.mxu0 %vm286_vm0, %v2791_v42 }
 0x108   : > { %2249 = vmatmul.msk.f32.gmra.mxu1 %vm286_vm0, %v2797_v43  ;;  %617 = vmatpush.msra.mxu0 %v2710_v4 }
 0x109   : > { %523 = vmatpush.msrb.mxu1 %v2710_v4 }
 0x10a   : > { %618 = vmatpush.msra.mxu0 %v2717_v5 }
 0x10b   : > { %524 = vmatpush.msrb.mxu1 %v2717_v5 }
 0x10c   : > { %619 = vmatpush.msra.mxu0 %v2724_v6 }
 0x10d   : > { %525 = vmatpush.msrb.mxu1 %v2724_v6 }
 0x10e   : > { %2259 = vmatmul.msk.f32.gmra.mxu3 %vm286_vm0, %v2791_v42  ;;  %620 = vmatpush.msra.mxu0 %v2731_v7 }
 0x10f   : > { %526 = vmatpush.msrb.mxu1 %v2731_v7  ;;  %2274 = vmatmul.msk.f32.vlgmr.msra.gmra.mxu0 %vm286_vm0, %v254_v44 }
 0x110   : > { %2262 = vmatmul.msk.f32.vlgmr.msrb.gmra.mxu1 %vm286_vm0, %v246_v45 }
 0x116   : > { %2260 = vmatmul.msk.f32.gmra.mxu3 %vm286_vm0, %v2777_v41 }
 0x117   : > { %2275 = vmatmul.msk.f32.gmra.mxu0 %vm286_vm0, %v255_v46 }
 0x118   : > { %2263 = vmatmul.msk.f32.gmra.mxu1 %vm286_vm0, %v247_v47 }
 0x11e   : > { %2261 = vmatmul.msk.f32.gmra.mxu3 %vm286_vm0, %v2797_v43 }
 0x11f   : > { %2276 = vmatmul.msk.f32.gmra.mxu0 %vm286_vm0, %v256_v48 }
 0x120   : > { %2264 = vmatmul.msk.f32.gmra.mxu1 %vm286_vm0, %v248_v49 }
 0x127   : > { %2277 = vmatmul.msk.f32.gmra.mxu0 %vm286_vm0, %v257_v50 }
 0x128   : > { %2265 = vmatmul.msk.f32.gmra.mxu1 %vm286_vm0, %v249_v51 }
 0x12f   : > { %2278 = vmatmul.msk.f32.gmra.mxu0 %vm286_vm0, %v258_v52 }
 0x130   : > { %2266 = vmatmul.msk.f32.gmra.mxu1 %vm286_vm0, %v250_v53 }
 0x137   : > { %2279 = vmatmul.msk.f32.gmra.mxu0 %vm286_vm0, %v259_v54 }
 0x138   : > { %2267 = vmatmul.msk.f32.gmra.mxu1 %vm286_vm0, %v251_v55 }
 0x13f   : > { %2280 = vmatmul.msk.f32.gmra.mxu0 %vm286_vm0, %v260_v56 }
 0x140   : > { %2268 = vmatmul.msk.f32.gmra.mxu1 %vm286_vm0, %v252_v57 }
 0x147   : > { %2281 = vmatmul.msk.f32.gmra.mxu0 %vm286_vm0, %v261_v58 }
 0x148   : > { %2269 = vmatmul.msk.f32.gmra.mxu1 %vm286_vm0, %v253_v59 }
 0x17c   : > { %v2853_v60 = vpop.f32.mrf.mxu0 }
 0x17d   : > { %v2855_v61 = vpop.f32.mrf.mxu1 }
 0x17e   : > { %v1412_v55 = vrot.slane %v2855_v61, 3 }
 0x184   : > { %v2857_v62 = vpop.f32.mrf.mxu0 }
 0x185   : > { %v2859_v63 = vpop.f32.mrf.mxu1 }
 0x189   : > { %v2925_v44 = vpop.f32.mrf.mxu3 }
 0x18c   : > { %v622_v8 = vpop.f32.mrf.mxu0 }
 0x18d   : > { %v528_v9 = vpop.f32.mrf.mxu1 }
 0x191   : > { %v2927_v45 = vpop.f32.mrf.mxu3 }
 0x194   : > { %v625_v10 = vpop.f32.mrf.mxu0 }
 0x195   : > { %v531_v11 = vpop.f32.mrf.mxu1 }
 0x199   : > { %v2929_v46 = vpop.f32.mrf.mxu3 }
 0x19a   : > { %v1414_v54 = vrot.slane %v2929_v46, 2 }
 0x19c   : > { %v628_v12 = vpop.f32.mrf.mxu0  ;;  %v1424_v57 = vsel %vm978_vm1, %v1412_v55, %v1414_v54 }
 0x19d   : > { %v534_v13 = vpop.f32.mrf.mxu1 }
 0x1a1   : > { %v2931_v47 = vpop.f32.mrf.mxu3 }
 0x1a4   : > { %v631_v14 = vpop.f32.mrf.mxu0 }
 0x1a5   : > { %v537_v15 = vpop.f32.mrf.mxu1 }
 0x1ac   : > { %v634_v16 = vpop.f32.mrf.mxu0 }
 0x1ad   : > { %v540_v17 = vpop.f32.mrf.mxu1 }
 0x1b4   : > { %v637_v18 = vpop.f32.mrf.mxu0 }
 0x1b5   : > { %v543_v19 = vpop.f32.mrf.mxu1 }
 0x1bc   : > { %v640_v20 = vpop.f32.mrf.mxu0 }
 0x1bd   : > { %v546_v21 = vpop.f32.mrf.mxu1 }
 0x1c4   : > { %v643_v22 = vpop.f32.mrf.mxu0 }
 0x1c5   : > { %v549_v23 = vpop.f32.mrf.mxu1  ;;  %654 = vmatpush.msrb.mxu2 %v643_v22 }
 0x1c6   : > { %560 = vmatpush.msrb.mxu3 %v549_v23 }
 0x1c7   : > { %655 = vmatpush.msrb.mxu2 %v640_v20 }
 0x1c8   : > { %561 = vmatpush.msrb.mxu3 %v546_v21 }
 0x1c9   : > { %656 = vmatpush.msrb.mxu2 %v637_v18 }
 0x1ca   : > { %562 = vmatpush.msrb.mxu3 %v543_v19 }
 0x1cb   : > { %657 = vmatpush.msrb.mxu2 %v634_v16 }
 0x1cc   : > { %563 = vmatpush.msrb.mxu3 %v540_v17 }
 0x1cd   : > { %658 = vmatpush.msrb.mxu2 %v631_v14 }
 0x1ce   : > { %564 = vmatpush.msrb.mxu3 %v537_v15 }
 0x1cf   : > { %659 = vmatpush.msrb.mxu2 %v628_v12 }
 0x1d0   : > { %565 = vmatpush.msrb.mxu3 %v534_v13 }
 0x1d1   : > { %660 = vmatpush.msrb.mxu2 %v625_v10  ;;  %v1664_v10 = vrot.slane %v2931_v47, 5 }
 0x1d2   : > { %566 = vmatpush.msrb.mxu3 %v531_v11  ;;  %v1662_v11 = vrot.slane %v2859_v63, 6 }
 0x1d3   : > { %661 = vmatpush.msrb.mxu2 %v622_v8 }
 0x1d4   : > { %567 = vmatpush.msrb.mxu3 %v528_v9  ;;  %2282 = vmatmul.msk.f32.vlgmr.msrb.gmra.mxu2 %vm286_vm0, %v2772_v40  ;;  %v1674_v14 = vsel %vm978_vm1, %v1662_v11, %v1664_v10 }
 0x1d5   : > { %2270 = vmatmul.msk.f32.vlgmr.msrb.gmra.mxu3 %vm286_vm0, %v2772_v40  ;;  %801 = vmatpush.msra.mxu2 %v2684_v0 }
 0x1d6   : > { %707 = vmatpush.msra.mxu3 %v2684_v0 }
 0x1d7   : > { %802 = vmatpush.msra.mxu2 %v2689_v1 }
 0x1d8   : > { %708 = vmatpush.msra.mxu3 %v2689_v1 }
 0x1d9   : > { %803 = vmatpush.msra.mxu2 %v2696_v2 }
 0x1da   : > { %709 = vmatpush.msra.mxu3 %v2696_v2 }
 0x1db   : > { %804 = vmatpush.msra.mxu2 %v2703_v3 }
 0x1dc   : > { %2283 = vmatmul.msk.f32.gmra.mxu2 %vm286_vm0, %v2791_v42  ;;  %710 = vmatpush.msra.mxu3 %v2703_v3 }
 0x1dd   : > { %2271 = vmatmul.msk.f32.gmra.mxu3 %vm286_vm0, %v2791_v42  ;;  %805 = vmatpush.msra.mxu2 %v2710_v4 }
 0x1de   : > { %711 = vmatpush.msra.mxu3 %v2710_v4 }
 0x1df   : > { %806 = vmatpush.msra.mxu2 %v2717_v5 }
 0x1e0   : > { %712 = vmatpush.msra.mxu3 %v2717_v5 }
 0x1e1   : > { %807 = vmatpush.msra.mxu2 %v2724_v6 }
 0x1e2   : > { %713 = vmatpush.msra.mxu3 %v2724_v6 }
 0x1e3   : > { %808 = vmatpush.msra.mxu2 %v2731_v7 }
 0x1e4   : > { %2284 = vmatmul.msk.f32.gmra.mxu2 %vm286_vm0, %v2777_v41  ;;  %714 = vmatpush.msra.mxu3 %v2731_v7 }
 0x1e5   : > { %2272 = vmatmul.msk.f32.gmra.mxu3 %vm286_vm0, %v2777_v41 }
 0x1ec   : > { %2285 = vmatmul.msk.f32.gmra.mxu2 %vm286_vm0, %v2797_v43 }
 0x1ed   : > { %2273 = vmatmul.msk.f32.gmra.mxu3 %vm286_vm0, %v2797_v43 }
 0x1f4   : > { %2298 = vmatmul.msk.f32.vlgmr.msra.gmra.mxu2 %vm286_vm0, %v270_v24 }
 0x1f5   : > { %2286 = vmatmul.msk.f32.vlgmr.msra.gmra.mxu3 %vm286_vm0, %v262_v25 }
 0x1fc   : > { %2299 = vmatmul.msk.f32.gmra.mxu2 %vm286_vm0, %v271_v26 }
 0x1fd   : > { %2287 = vmatmul.msk.f32.gmra.mxu3 %vm286_vm0, %v263_v27 }
 0x204   : > { %2300 = vmatmul.msk.f32.gmra.mxu2 %vm286_vm0, %v272_v28 }
 0x205   : > { %2288 = vmatmul.msk.f32.gmra.mxu3 %vm286_vm0, %v264_v29 }
 0x20c   : > { %2301 = vmatmul.msk.f32.gmra.mxu2 %vm286_vm0, %v273_v30 }
 0x20d   : > { %2289 = vmatmul.msk.f32.gmra.mxu3 %vm286_vm0, %v265_v31 }
 0x214   : > { %2302 = vmatmul.msk.f32.gmra.mxu2 %vm286_vm0, %v274_v32 }
 0x215   : > { %2290 = vmatmul.msk.f32.gmra.mxu3 %vm286_vm0, %v266_v33 }
 0x21c   : > { %2303 = vmatmul.msk.f32.gmra.mxu2 %vm286_vm0, %v275_v34 }
 0x21d   : > { %2291 = vmatmul.msk.f32.gmra.mxu3 %vm286_vm0, %v267_v35 }
 0x224   : > { %2304 = vmatmul.msk.f32.gmra.mxu2 %vm286_vm0, %v276_v36 }
 0x225   : > { %2292 = vmatmul.msk.f32.gmra.mxu3 %vm286_vm0, %v268_v37 }
 0x22c   : > { %2305 = vmatmul.msk.f32.gmra.mxu2 %vm286_vm0, %v277_v38 }
 0x22d   : > { %2293 = vmatmul.msk.f32.gmra.mxu3 %vm286_vm0, %v269_v39 }
 0x257   : > { %v2933_v48 = vpop.f32.mrf.mxu2 }
 0x258   : > { %v2935_v49 = vpop.f32.mrf.mxu3 }
 0x25f   : > { %v2937_v50 = vpop.f32.mrf.mxu2 }
 0x260   : > { %v2939_v51 = vpop.f32.mrf.mxu3 }
 0x267   : > { %v2941_v52 = vpop.f32.mrf.mxu2 }
 0x268   : > { %v2943_v53 = vpop.f32.mrf.mxu3 }
 0x269   : > { %v1416_v56 = vrot.slane %v2943_v53, 1 }
 0x26b   : > { %v1425_v58 = vsel %vm980_vm2, %v1424_v57, %v1416_v56 }
 0x26c   : > { %v2952_v59 = vsel %vm982_vm3, %v1425_v58, %v2941_v52 }
 0x26f   : > { %v2954_v8 = vpop.f32.mrf.mxu2 }
 0x270   : > { %v2956_v9 = vpop.f32.mrf.mxu3  ;;  %v1668_v13 = vrot.slane %v2954_v8, 3 }
 0x271   : > { %v1666_v12 = vrot.slane %v2956_v9, 4 }
 0x273   : > { %v1675_v15 = vsel %vm980_vm2, %v1674_v14, %v1666_v12 }
 0x274   : > { %v2965_v16 = vsel %vm982_vm3, %v1675_v15, %v1668_v13 }
 0x277   : > { %v810_v17 = vpop.f32.mrf.mxu2 }
 0x278   : > { %v716_v18 = vpop.f32.mrf.mxu3 }
 0x27f   : > { %v813_v19 = vpop.f32.mrf.mxu2 }
 0x280   : > { %v719_v20 = vpop.f32.mrf.mxu3 }
 0x287   : > { %v816_v21 = vpop.f32.mrf.mxu2 }
 0x288   : > { %v722_v22 = vpop.f32.mrf.mxu3 }
 0x28f   : > { %v819_v23 = vpop.f32.mrf.mxu2 }
 0x290   : > { %v725_v24 = vpop.f32.mrf.mxu3 }
 0x297   : > { %v822_v25 = vpop.f32.mrf.mxu2 }
 0x298   : > { %v728_v26 = vpop.f32.mrf.mxu3 }
 0x29f   : > { %v825_v27 = vpop.f32.mrf.mxu2 }
 0x2a0   : > { %v731_v28 = vpop.f32.mrf.mxu3 }
 0x2a7   : > { %v828_v29 = vpop.f32.mrf.mxu2 }
 0x2a8   : > { %v734_v30 = vpop.f32.mrf.mxu3 }
 0x2af   : > { %v831_v31 = vpop.f32.mrf.mxu2 }
 0x2b0   : > { %v737_v32 = vpop.f32.mrf.mxu3  ;;  %842 = vmatpush.msrb.mxu0 %v831_v31  ;;  %2400 = vmatpush.msrb.mxu2 %v831_v31 }
 0x2b1   : > { %748 = vmatpush.msra.mxu1 %v737_v32 }
 0x2b2   : > { %843 = vmatpush.msrb.mxu0 %v828_v29  ;;  %2401 = vmatpush.msrb.mxu2 %v828_v29  ;;  %v961_v29 = vrot.slane %v2925_v44, 7 }
 0x2b3   : > { %749 = vmatpush.msra.mxu1 %v734_v30  ;;  %v1067_v30 = vrot.slane %v2925_v44, 3 }
 0x2b4   : > { %844 = vmatpush.msrb.mxu0 %v825_v27  ;;  %2402 = vmatpush.msrb.mxu2 %v825_v27  ;;  %v1271_v27 = vrot.slane %v2927_v45, 4 }
 0x2b5   : > { %750 = vmatpush.msra.mxu1 %v731_v28 }
 0x2b6   : > { %845 = vmatpush.msrb.mxu0 %v822_v25  ;;  %2403 = vmatpush.msrb.mxu2 %v822_v25 }
 0x2b7   : > { %751 = vmatpush.msra.mxu1 %v728_v26  ;;  %v1366_v26 = vrot.slane %v2855_v61, 1 }
 0x2b8   : > { %846 = vmatpush.msrb.mxu0 %v819_v23  ;;  %2404 = vmatpush.msrb.mxu2 %v819_v23  ;;  %v1477_v23 = vrot.slane %v2855_v61, 6 }
 0x2b9   : > { %752 = vmatpush.msra.mxu1 %v725_v24  ;;  %v1389_v24 = vrot.slane %v2855_v61, 2  ;;  %v3089_v32 = vsel %vm978_vm1, %v1366_v26, %v2929_v46  ;;  %v1181_v26 = vrot.slane %v2857_v62, 1 }
 0x2ba   : > { %847 = vmatpush.msrb.mxu0 %v816_v21  ;;  %2405 = vmatpush.msrb.mxu2 %v816_v21 }
 0x2bb   : > { %753 = vmatpush.msra.mxu1 %v722_v22  ;;  %v1435_v22 = vrot.slane %v2855_v61, 4 }
 0x2bc   : > { %848 = vmatpush.msrb.mxu0 %v813_v19  ;;  %2406 = vmatpush.msrb.mxu2 %v813_v19 }
 0x2bd   : > { %754 = vmatpush.msra.mxu1 %v719_v20 }
 0x2be   : > { %849 = vmatpush.msrb.mxu0 %v810_v17  ;;  %2407 = vmatpush.msrb.mxu2 %v810_v17 }
 0x2bf   : > { %755 = vmatpush.msra.mxu1 %v716_v18  ;;  %2306 = vmatmul.msk.f32.vlgmr.msrb.gmra.mxu0 %vm286_vm0, %v2772_v40 }
 0x2c0   : > { %2294 = vmatmul.msk.f32.vlgmr.msra.gmra.mxu1 %vm286_vm0, %v2772_v40  ;;  %2309 = vmatmul.msk.f32.vlgmr.msrb.gmra.mxu2 %vm286_vm0, %v2797_v43 }
 0x2c1   : > { %895 = vmatpush.msrb.mxu1 %v2684_v0  ;;  %v278_v0 = vld [vmem:[%s2675_s13 + $0x180] sm:$0xff] }
 0x2c3   : > { %896 = vmatpush.msrb.mxu1 %v2689_v1  ;;  %v279_v1 = vld [vmem:[%s2675_s13 + $0x188] sm:$0xff] }
 0x2c5   : > { %897 = vmatpush.msrb.mxu1 %v2696_v2  ;;  %v280_v2 = vld [vmem:[%s2675_s13 + $0x190] sm:$0xff] }
 0x2c7   : > { %2307 = vmatmul.msk.f32.gmra.mxu0 %vm286_vm0, %v2791_v42  ;;  %898 = vmatpush.msrb.mxu1 %v2703_v3  ;;  %v281_v3 = vld [vmem:[%s2675_s13 + $0x198] sm:$0xff] }
 0x2c8   : > { %2295 = vmatmul.msk.f32.gmra.mxu1 %vm286_vm0, %v2791_v42 }
 0x2c9   : > { %899 = vmatpush.msrb.mxu1 %v2710_v4  ;;  %v282_v4 = vld [vmem:[%s2675_s13 + $0x1a0] sm:$0xff] }
 0x2cb   : > { %900 = vmatpush.msrb.mxu1 %v2717_v5  ;;  %v283_v5 = vld [vmem:[%s2675_s13 + $0x1a8] sm:$0xff] }
 0x2cd   : > { %901 = vmatpush.msrb.mxu1 %v2724_v6  ;;  %v284_v6 = vld [vmem:[%s2675_s13 + $0x1b0] sm:$0xff] }
 0x2cf   : > { %2308 = vmatmul.msk.f32.gmra.mxu0 %vm286_vm0, %v2777_v41  ;;  %902 = vmatpush.msrb.mxu1 %v2731_v7  ;;  %v285_v7 = vld [vmem:[%s2675_s13 + $0x1b8] sm:$0xff]  ;;  %s2565_s13 = smov 64  }
 0x2d0   : > { %2296 = vmatmul.msk.f32.gmra.mxu1 %vm286_vm0, %v2777_v41 }
 0x2d8   : > { %2297 = vmatmul.msk.f32.gmra.mxu1 %vm286_vm0, %v2797_v43 }
 0x2e0   : > { %2310 = vmatmul.msk.f32.vlgmr.msrb.gmra.mxu1 %vm286_vm0, %v278_v0  ;;  %v1136_v0 = vrot.slane %v2933_v48, 4 }
 0x2e8   : > { %2311 = vmatmul.msk.f32.gmra.mxu1 %vm286_vm0, %v279_v1 }
 0x2f0   : > { %2312 = vmatmul.msk.f32.gmra.mxu1 %vm286_vm0, %v280_v2  ;;  %v1341_v2 = vrot.slane %v2929_v46, 7 }
 0x2f8   : > { %2313 = vmatmul.msk.f32.gmra.mxu1 %vm286_vm0, %v281_v3  ;;  %v1437_v3 = vrot.slane %v2929_v46, 3 }
 0x2fa   : > { %v3092_v31 = vsel %vm978_vm1, %v1435_v22, %v1437_v3  ;;  %v993_v3 = vrot.slane %v2853_v60, 1 }
 0x300   : > { %2314 = vmatmul.msk.f32.gmra.mxu1 %vm286_vm0, %v282_v4  ;;  %v1479_v4 = vrot.slane %v2929_v46, 5 }
 0x308   : > { %2315 = vmatmul.msk.f32.gmra.mxu1 %vm286_vm0, %v283_v5  ;;  %v1391_v5 = vrot.slane %v2929_v46, 1 }
 0x310   : > { %2316 = vmatmul.msk.f32.gmra.mxu1 %vm286_vm0, %v284_v6  ;;  %v1088_v6 = vrot.slane %v2935_v49, 3 }
 0x318   : > { %2317 = vmatmul.msk.f32.gmra.mxu1 %vm286_vm0, %v285_v7 }
 0x33c   : > { %v3007_v33 = vpop.f32.mrf.mxu0 }
 0x33d   : > { %v3009_v34 = vpop.f32.mrf.mxu1 }
 0x343   : > { %v3028_v58 = vpop.f32.mrf.mxu2 }
 0x344   : > { %v3011_v35 = vpop.f32.mrf.mxu0  ;;  %v1672_v11 = vrot.slane %v3028_v58, 1 }
 0x345   : > { %v3013_v36 = vpop.f32.mrf.mxu1 }
 0x34c   : > { %v3015_v37 = vpop.f32.mrf.mxu0 }
 0x34d   : > { %v3017_v38 = vpop.f32.mrf.mxu1  ;;  %v1420_v54 = vrot.slane %v3015_v37, 6 }
 0x34e   : > { %v1418_v39 = vrot.slane %v3017_v38, 7 }
 0x350   : > { %v1427_v55 = vsel %vm984_vm4, %v2952_v59, %v1418_v39  ;;  %v1526_v39 = vrot.slane %v2931_v47, 7 }
 0x351   : > { %v3024_v56 = vsel %vm986_vm5, %v1427_v55, %v1420_v54  ;;  %v1622_v54 = vrot.slane %v2931_v47, 3  ;;  %v1107_v55 = vrot.slane %v2853_v60, 6 }
 0x355   : > { %v3026_v57 = vpop.f32.mrf.mxu1 }
 0x356   : > { %v1670_v10 = vrot.slane %v3026_v57, 2 }
 0x358   : > { %v1677_v12 = vsel %vm984_vm4, %v2965_v16, %v1670_v10  ;;  %v1065_v16 = vrot.slane %v2853_v60, 4  ;;  %v1109_v10 = vrot.slane %v2925_v44, 5 }
 0x359   : > { %v3035_v13 = vsel %vm986_vm5, %v1677_v12, %v1672_v11  ;;  %v1130_v11 = vrot.slane %v2853_v60, 7  ;;  %v1132_v12 = vrot.slane %v2925_v44, 6 }
 0x35a   : > { %v1119_v28 = vsel %vm978_vm1, %v1107_v55, %v1109_v10  ;;  %v1204_v10 = vrot.slane %v2857_v62, 2 }
 0x35d   : > { %v904_v14 = vpop.f32.mrf.mxu1 }
 0x365   : > { %v907_v15 = vpop.f32.mrf.mxu1 }
 0x36d   : > { %v910_v59 = vpop.f32.mrf.mxu1 }
 0x375   : > { %v913_v17 = vpop.f32.mrf.mxu1 }
 0x37d   : > { %v916_v18 = vpop.f32.mrf.mxu1 }
 0x385   : > { %v919_v19 = vpop.f32.mrf.mxu1 }
 0x38d   : > { %v922_v20 = vpop.f32.mrf.mxu1 }
 0x395   : > { %v925_v21 = vpop.f32.mrf.mxu1 }
 0x396   : > { %936 = vmatpush.msrb.mxu3 %v925_v21  ;;  %v3085_v21 = vsel %vm978_vm1, %v1389_v24, %v1391_v5  ;;  %v1227_v5 = vrot.slane %v2857_v62, 3 }
 0x398   : > { %937 = vmatpush.msrb.mxu3 %v922_v20  ;;  %v3082_v20 = vsel %vm978_vm1, %v1477_v23, %v1479_v4  ;;  %v3101_v23 = vsel %vm978_vm1, %v2855_v61, %v1341_v2  ;;  %v1144_v4 = vsel %vm978_vm1, %v1130_v11, %v1132_v12  ;;  %v1317_v11 = vrot.slane %v2927_v45, 6 }
 0x399   : > { %v1292_v12 = vrot.slane %v2857_v62, 6 }
 0x39a   : > { %938 = vmatpush.msrb.mxu3 %v919_v19  ;;  %v1019_v19 = vrot.slane %v2925_v44, 1 }
 0x39c   : > { %939 = vmatpush.msrb.mxu3 %v916_v18  ;;  %v1017_v18 = vrot.slane %v2853_v60, 2 }
 0x39e   : > { %940 = vmatpush.msrb.mxu3 %v913_v17  ;;  %v1086_v17 = vrot.slane %v2925_v44, 4  ;;  %v1029_v2 = vsel %vm978_vm1, %v1017_v18, %v1019_v19  ;;  %v1005_v18 = vsel %vm978_vm1, %v993_v3, %v2925_v44  ;;  %v1077_v19 = vsel %vm978_vm1, %v1065_v16, %v1067_v30 }
 0x39f   : > { %v1113_v3 = vrot.slane %v2933_v48, 3 }
 0x3a0   : > { %941 = vmatpush.msrb.mxu3 %v910_v59  ;;  %v1084_v59 = vrot.slane %v2853_v60, 5 }
 0x3a2   : > { %942 = vmatpush.msrb.mxu3 %v907_v15  ;;  %v1043_v15 = vrot.slane %v2925_v44, 2  ;;  %v1096_v55 = vsel %vm978_vm1, %v1084_v59, %v1086_v17  ;;  %v1111_v59 = vrot.slane %v2935_v49, 4  ;;  %v1193_v17 = vsel %vm978_vm1, %v1181_v26, %v2927_v45 }
 0x3a3   : > { %v995_v26 = vrot.slane %v2935_v49, 7  ;;  %v979_v44 = vsel %vm978_vm1, %v2853_v60, %v961_v29  ;;  %v1097_v29 = vsel %vm980_vm2, %v1096_v55, %v1088_v6 }
 0x3a4   : > { %943 = vmatpush.msrb.mxu3 %v904_v14  ;;  %v1041_v14 = vrot.slane %v2853_v60, 3 }
 0x3a5   : > { %2318 = vmatmul.msk.f32.vlgmr.msrb.gmra.mxu3 %vm286_vm0, %v2772_v40  ;;  %v1045_v40 = vrot.slane %v2935_v49, 1 }
 0x3a6   : > { %v1053_v22 = vsel %vm978_vm1, %v1041_v14, %v1043_v15  ;;  %v1294_v14 = vrot.slane %v2927_v45, 5  ;;  %v1269_v15 = vrot.slane %v2857_v62, 5 }
 0x3a7   : > { %v1054_v60 = vsel %vm980_vm2, %v1053_v22, %v1045_v40  ;;  %v1231_v40 = vrot.slane %v2939_v51, 1  ;;  %v3834_v22 = vrot.slane %v2857_v62, 4 }
 0x3a8   : > { %v1304_v16 = vsel %vm978_vm1, %v1292_v12, %v1294_v14  ;;  %v1281_v30 = vsel %vm978_vm1, %v1269_v15, %v1271_v27  ;;  %v1030_v27 = vsel %vm980_vm2, %v1029_v2, %v2935_v49  ;;  %v1006_v12 = vsel %vm980_vm2, %v1005_v18, %v995_v26 }
 0x3a9   : > { %v1071_v15 = vrot.slane %v2933_v48, 1  ;;  %v3173_v18 = vsel %vm982_vm3, %v1054_v60, %v2933_v48  ;;  %v1185_v60 = vrot.slane %v2937_v50, 6 }
 0x3ad   : > { %2319 = vmatmul.msk.f32.gmra.mxu3 %vm286_vm0, %v2791_v42  ;;  %v1134_v42 = vrot.slane %v2935_v49, 5 }
 0x3b5   : > { %2320 = vmatmul.msk.f32.gmra.mxu3 %vm286_vm0, %v2777_v41  ;;  %v1620_v41 = vrot.slane %v2859_v63, 4 }
 0x3b7   : > { %v3104_v24 = vsel %vm978_vm1, %v1620_v41, %v1622_v54  ;;  %v1206_v41 = vrot.slane %v2927_v45, 1  ;;  %v1315_v54 = vrot.slane %v2857_v62, 7 }
 0x3b9   : > { %v1216_v25 = vsel %vm978_vm1, %v1204_v10, %v1206_v41  ;;  %v1329_v1 = vsel %vm978_vm1, %v1315_v54, %v1317_v11  ;;  %v1090_v10 = vrot.slane %v2933_v48, 2  ;;  %v1021_v41 = vrot.slane %v2933_v48, 7 }
 0x3ba   : > { %v1145_v54 = vsel %vm980_vm2, %v1144_v4, %v1134_v42  ;;  %v997_v11 = vrot.slane %v2933_v48, 6  ;;  %v3833_v4 = vrot.slane %v2927_v45, 3 }
 0x3bb   : > { %v3168_v2 = vsel %vm982_vm3, %v1145_v54, %v1136_v0  ;;  %v3176_v26 = vsel %vm982_vm3, %v1097_v29, %v1090_v10  ;;  %v1217_v0 = vsel %vm980_vm2, %v1216_v25, %v2939_v51  ;;  %v967_v10 = vrot.slane %v2933_v48, 5 }
 0x3bc   : > { %v1262_v55 = vsel %vm978_vm1, %v3834_v22, %v3833_v4  ;;  %v1321_v29 = vrot.slane %v2937_v50, 4 }
 0x3bd   : > { %2321 = vmatmul.msk.f32.gmra.mxu3 %vm286_vm0, %v2797_v43  ;;  %v3097_v43 = vsel %vm978_vm1, %v2859_v63, %v1526_v39  ;;  %v1229_v39 = vrot.slane %v2927_v45, 2 }
 0x3bf   : > { %v1239_v7 = vsel %vm978_vm1, %v1227_v5, %v1229_v39  ;;  %v1069_v5 = vrot.slane %v2935_v49, 2  ;;  %v1120_v39 = vsel %vm980_vm2, %v1119_v28, %v1111_v59  ;;  %v3832_v28 = vrot.slane %v2927_v45, 7 }
 0x3c0   : > { %v1121_v42 = vsel %vm982_vm3, %v1120_v39, %v1113_v3  ;;  %v1183_v59 = vrot.slane %v2939_v51, 7  ;;  %v1319_v45 = vrot.slane %v2939_v51, 5  ;;  %v3184_v3 = vsel %vm982_vm3, %v1006_v12, %v997_v11 }
 0x3c1   : > { %v1173_v14 = vsel %vm978_vm1, %v2857_v62, %v3832_v28  ;;  %v1078_v6 = vsel %vm980_vm2, %v1077_v19, %v1069_v5  ;;  %v1208_v19 = vrot.slane %v2937_v50, 7  ;;  %v3181_v62 = vsel %vm982_vm3, %v1030_v27, %v1021_v41 }
 0x3c2   : > { %v1079_v5 = vsel %vm982_vm3, %v1078_v6, %v1071_v15  ;;  %v964_v39 = vrot.slane %v2935_v49, 6  ;;  %v1240_v54 = vsel %vm980_vm2, %v1239_v7, %v1231_v40  ;;  %v1159_v41 = vrot.slane %v2939_v51, 6 }
 0x3c3   : > { %v1194_v11 = vsel %vm980_vm2, %v1193_v17, %v1183_v59  ;;  %v1296_v27 = vrot.slane %v2939_v51, 4  ;;  %v1254_v12 = vrot.slane %v2939_v51, 2  ;;  %v3200_v49 = vsel %vm982_vm3, %v1217_v0, %v1208_v19 }
 0x3c4   : > { %v1330_v48 = vsel %vm980_vm2, %v1329_v1, %v1319_v45  ;;  %v1273_v7 = vrot.slane %v2939_v51, 3  ;;  %v1439_v28 = vrot.slane %v2943_v53, 2  ;;  %v1115_v15 = vrot.slane %v3009_v34, 2 }
 0x3c5   : > { %v1241_v17 = vsel %vm982_vm3, %v1240_v54, %v2937_v50  ;;  %v1162_v6 = vrot.slane %v2937_v50, 5  ;;  %v1195_v4 = vsel %vm982_vm3, %v1194_v11, %v1185_v60  ;;  %v1174_v22 = vsel %vm980_vm2, %v1173_v14, %v1159_v41 }
 0x3c6   : > { %v981_v59 = vsel %vm980_vm2, %v979_v44, %v964_v39  ;;  %v1256_v1 = vrot.slane %v2937_v50, 1  ;;  %v3215_v51 = vsel %vm982_vm3, %v1330_v48, %v1321_v29  ;;  %v3218_v19 = vsel %vm980_vm2, %v1304_v16, %v1296_v27 }
 0x3c7   : > { %v1263_v45 = vsel %vm980_vm2, %v1262_v55, %v1254_v12  ;;  %v1441_v0 = vrot.slane %v2941_v52, 1  ;;  %v1117_v54 = vrot.slane %v3007_v33, 1  ;;  %v3224_v60 = vsel %vm980_vm2, %v1281_v30, %v1273_v7 }
 0x3c8   : > { %v970_v14 = vrot.slane %v3009_v34, 4  ;;  %v1448_v44 = vsel %vm980_vm2, %v3092_v31, %v1439_v28  ;;  %v1122_v39 = vsel %vm984_vm4, %v1121_v42, %v1115_v15  ;;  %v1175_v29 = vsel %vm982_vm3, %v1174_v22, %v1162_v6 }
 0x3c9   : > { %v983_v16 = vsel %vm982_vm3, %v981_v59, %v967_v10  ;;  %v1344_v55 = vrot.slane %v2943_v53, 6  ;;  %v1481_v41 = vrot.slane %v2943_v53, 4  ;;  %v1483_v11 = vrot.slane %v2941_v52, 3 }
 0x3ca   : > { %v1264_v30 = vsel %vm982_vm3, %v1263_v45, %v1256_v1  ;;  %v1073_v27 = vrot.slane %v3007_v33, 7  ;;  %v973_v12 = vrot.slane %v3007_v33, 3  ;;  %v3239_v31 = vsel %vm982_vm3, %v1448_v44, %v1441_v0 }
 0x3cb   : > { %v1347_v42 = vrot.slane %v2941_v52, 5  ;;  %v1123_v10 = vsel %vm986_vm5, %v1122_v39, %v1117_v54  ;;  %v1080_v7 = vsel %vm984_vm4, %v1079_v5, %v3009_v34  ;;  %v985_v28 = vsel %vm984_vm4, %v983_v16, %v970_v14 }
 0x3cc   : > { %v1529_v15 = vrot.slane %v2956_v9, 6  ;;  %v1138_v22 = vrot.slane %v3009_v34, 3  ;;  %v1532_v59 = vrot.slane %v2954_v8, 5  ;;  %v1359_v1 = vsel %vm980_vm2, %v3101_v23, %v1344_v55 }
 0x3cd   : > { %v1624_v0 = vrot.slane %v2956_v9, 2  ;;  %v1233_v54 = vrot.slane %v3013_v36, 7  ;;  %v1187_v14 = vrot.slane %v3013_v36, 5  ;;  %v1081_v44 = vsel %vm986_vm5, %v1080_v7, %v1073_v27 }
 0x3ce   : > { %v987_v39 = vsel %vm986_vm5, %v985_v28, %v973_v12  ;;  %v1140_v23 = vrot.slane %v3007_v33, 2  ;;  %v1165_v16 = vrot.slane %v3013_v36, 4  ;;  %v1147_v40 = vsel %vm984_vm4, %v3168_v2, %v1138_v22 }
 0x3cf   : > { %v3273_v27 = vsel %vm980_vm2, %v3097_v43, %v1529_v15  ;;  %v1626_v12 = vrot.slane %v2954_v8, 1  ;;  %v1235_v7 = vrot.slane %v3011_v35, 6  ;;  %v1189_v28 = vrot.slane %v3011_v35, 4 }
 0x3d0   : > { %v1242_v2 = vsel %vm984_vm4, %v1241_v17, %v1233_v54  ;;  %v1196_v22 = vsel %vm984_vm4, %v1195_v4, %v1187_v14  ;;  %v1258_v43 = vrot.slane %v3011_v35, 7  ;;  %v1176_v25 = vsel %vm984_vm4, %v1175_v29, %v1165_v16 }
 0x3d1   : > { %v1197_v54 = vsel %vm986_vm5, %v1196_v22, %v1189_v28  ;;  %v1633_v22 = vsel %vm980_vm2, %v3104_v24, %v1624_v0  ;;  %v999_v24 = vrot.slane %v3009_v34, 5 }
 0x428   : > { %v3242_v48 = vpop.f32.mrf.mxu3 }
 0x429   : > { %v1124_v6 = vsel %vm988_vm6, %v1123_v10, %v3242_v48  ;;  %v1075_v5 = vrot.slane %v3242_v48, 6  ;;  %v976_v45 = vrot.slane %v3242_v48, 2  ;;  %v1094_v0 = vrot.slane %v3242_v48, 7 }
 0x42a   : > { %1126 = vrot.lane.b32.xlu2 %v1124_v6, %s2565_s13  ;;  %v1142_v6 = vrot.slane %v3242_v48, 1 }
 0x42b   : > { %v1082_v55 = vsel %vm988_vm6, %v1081_v44, %v1075_v5  ;;  %v989_v10 = vsel %vm988_vm6, %v987_v39, %v976_v45  ;;  %v1047_v5 = vrot.slane %v3009_v34, 7  ;;  %v1360_v45 = vsel %vm982_vm3, %v1359_v1, %v1347_v42 }
 0x42c   : > { %1083 = vst.msk [vmem:[#allocation2 + $0x8] sm:$0x7f] %vm990_vm7, %v1082_v55  ;;  %v1168_v44 = vrot.slane %v3011_v35, 3  ;;  %v1148_v39 = vsel %vm986_vm5, %v1147_v40, %v1140_v23  ;;  %v1092_v55 = vrot.slane %v3009_v34, 1  ;;  %v1210_v1 = vrot.slane %v3013_v36, 6 }
 0x42d   : > { %991 = vst.msk [vmem:[#allocation2] sm:$0x7f] %vm990_vm7, %v989_v10  ;;  %v1265_v10 = vsel %vm984_vm4, %v1264_v30, %v3013_v36  ;;  %v1149_v42 = vsel %vm988_vm6, %v1148_v39, %v1142_v6  ;;  %v1243_v40 = vsel %vm986_vm5, %v1242_v2, %v1235_v7  ;;  %v1049_v7 = vrot.slane %v3007_v33, 6 }
 0x42e   : > { %v1177_v16 = vsel %vm986_vm5, %v1176_v25, %v1168_v44  ;;  %v1266_v6 = vsel %vm986_vm5, %v1265_v10, %v1258_v43  ;;  %v1051_v39 = vrot.slane %v3242_v48, 5  ;;  %v1056_v25 = vsel %vm984_vm4, %v3173_v18, %v1047_v5 }
 0x42f   : > { %v1025_v44 = vrot.slane %v3007_v33, 5  ;;  %v1350_v43 = vrot.slane %v3017_v38, 4  ;;  %v1099_v10 = vsel %vm984_vm4, %v3176_v26, %v1092_v55  ;;  %v1219_v5 = vsel %vm984_vm4, %v3200_v49, %v1210_v1 }
 0x430   : > { %v3285_v15 = vpop.f32.mrf.mxu3  ;;  %v1057_v26 = vsel %vm986_vm5, %v1056_v25, %v1049_v7  ;;  %v1001_v55 = vrot.slane %v3007_v33, 4  ;;  %v1323_v49 = vrot.slane %v3013_v36, 3 }
 0x431   : > { %v1237_v17 = vrot.slane %v3285_v15, 5  ;;  %v1191_v4 = vrot.slane %v3285_v15, 3  ;;  %v1171_v29 = vrot.slane %v3285_v15, 2  ;;  %v1260_v14 = vrot.slane %v3285_v15, 6 }
 0x432   : > { %1151 = vrot.lane.b32.xlu2 %v1149_v42, %s2566_s29  ;;  %v1212_v42 = vrot.slane %v3011_v35, 5  ;;  %v1214_v18 = vrot.slane %v3285_v15, 4  ;;  %v1361_v1 = vsel %vm984_vm4, %v1360_v45, %v1350_v43  ;;  %v1327_v43 = vrot.slane %v3285_v15, 1 }
 0x433   : > { %v1244_v30 = vsel %vm988_vm6, %v1243_v40, %v1237_v17  ;;  %v1198_v23 = vsel %vm988_vm6, %v1197_v54, %v1191_v4  ;;  %v1178_v28 = vsel %vm988_vm6, %v1177_v16, %v1171_v29  ;;  %v1267_v2 = vsel %vm988_vm6, %v1266_v6, %v1260_v14 }
 0x434   : > { %1246 = vrot.lane.b32.xlu1 %v1244_v30, %s2566_s29  ;;  %1200 = vrot.lane.b32.xlu0 %v1198_v23, %s2567_s5  ;;  %1179 = vst.msk [vmem:[#allocation2 + $0x10] sm:$0x7f] %vm990_vm7, %v1178_v28  ;;  %v1023_v17 = vrot.slane %v3009_v34, 6  ;;  %v1443_v4 = vrot.slane %v3015_v37, 7  ;;  %v1450_v34 = vsel %vm984_vm4, %v3239_v31, %v3017_v38  ;;  %v1353_v54 = vrot.slane %v3015_v37, 3 }
 0x435   : > { %1268 = vst.msk [vmem:[#allocation2 + $0x18] sm:$0x7f] %vm990_vm7, %v1267_v2  ;;  %v1058_v29 = vsel %vm988_vm6, %v1057_v26, %v1051_v39  ;;  %v1100_v14 = vsel %vm986_vm5, %v1099_v10, %v3007_v33  ;;  %v1220_v30 = vsel %vm986_vm5, %v1219_v5, %v1212_v42  ;;  %v1325_v33 = vrot.slane %v3011_v35, 2 }
 0x436   : > { %v1101_v6 = vsel %vm988_vm6, %v1100_v14, %v1094_v0  ;;  %v1221_v7 = vsel %vm988_vm6, %v1220_v30, %v1214_v18  ;;  %v1451_v28 = vsel %vm986_vm5, %v1450_v34, %v1443_v4  ;;  %v1535_v39 = vrot.slane %v3026_v57, 4 }
 0x437   : > { %v1362_v25 = vsel %vm986_vm5, %v1361_v1, %v1353_v54  ;;  %v1332_v10 = vsel %vm984_vm4, %v3215_v51, %v1323_v49  ;;  %v1032_v42 = vsel %vm984_vm4, %v3181_v62, %v1023_v17  ;;  %v1490_v18 = vsel %vm980_vm2, %v3082_v20, %v1481_v41 }
 0x438   : > { %v3329_v40 = vpop.f32.mrf.mxu3  ;;  %v1545_v51 = vsel %vm982_vm3, %v3273_v27, %v1532_v59  ;;  %v1634_v62 = vsel %vm982_vm3, %v1633_v22, %v1626_v12  ;;  %v1027_v17 = vrot.slane %v3242_v48, 4  ;;  %v1628_v5 = vrot.slane %v3028_v58, 7 }
 0x439   : > { %v1422_v23 = vrot.slane %v3329_v40, 5  ;;  %v1445_v16 = vrot.slane %v3329_v40, 6  ;;  %v1356_v31 = vrot.slane %v3329_v40, 2  ;;  %v1333_v41 = vsel %vm986_vm5, %v1332_v10, %v1325_v33 }
 0x43a   : > { %1060 = vrot.lane.b32.xlu2 %v1058_v29, %s2566_s29  ;;  %v1033_v59 = vsel %vm986_vm5, %v1032_v42, %v1025_v44  ;;  %v1546_v27 = vsel %vm984_vm4, %v1545_v51, %v1535_v39  ;;  %v1635_v4 = vsel %vm984_vm4, %v1634_v62, %v3026_v57  ;;  %v1334_v12 = vsel %vm988_vm6, %v1333_v41, %v1327_v43 }
 0x43b   : > { %v3355_v45 = vsel %vm988_vm6, %v3024_v56, %v1422_v23  ;;  %v1452_v2 = vsel %vm988_vm6, %v1451_v28, %v1445_v16  ;;  %v1363_v0 = vsel %vm988_vm6, %v1362_v25, %v1356_v31  ;;  %v1008_v56 = vsel %vm984_vm4, %v3184_v3, %v999_v24 }
 0x43c   : > { %1103 = vrot.lane.b32.xlu1 %v1101_v6, %s2567_s5  ;;  %1223 = vrot.lane.b32.xlu0 %v1221_v7, %s2565_s13  ;;  %1453 = vst.msk [vmem:[#allocation2 + $0x28] sm:$0x7f] %vm990_vm7, %v1452_v2  ;;  %v1003_v3 = vrot.slane %v3242_v48, 3  ;;  %v1538_v24 = vrot.slane %v3028_v58, 3  ;;  %v1009_v22 = vsel %vm986_vm5, %v1008_v56, %v1001_v55  ;;  %v1485_v48 = vrot.slane %v3017_v38, 2 }
 0x43d   : > { %1364 = vst.msk [vmem:[#allocation2 + $0x20] sm:$0x7f] %vm990_vm7, %v1363_v0  ;;  %v1300_v26 = vrot.slane %v3013_v36, 2  ;;  %v1277_v34 = vrot.slane %v3013_v36, 1  ;;  %v1034_v14 = vsel %vm988_vm6, %v1033_v59, %v1027_v17  ;;  %v1636_v1 = vsel %vm986_vm5, %v1635_v4, %v1628_v5 }
 0x43e   : > { %v1010_v55 = vsel %vm988_vm6, %v1009_v22, %v1003_v3  ;;  %v1547_v49 = vsel %vm986_vm5, %v1546_v27, %v1538_v24  ;;  %v1487_v36 = vrot.slane %v3015_v37, 1  ;;  %v3835_v31 = vrot.slane %v2937_v50, 3 }
 0x43f   : > { %v3836_v7 = vrot.slane %v2929_v46, 6  ;;  %v3837_v33 = vrot.slane %v2855_v61, 7  ;;  %v3838_v2 = vrot.slane %v2929_v46, 4  ;;  %v1302_v25 = vrot.slane %v3011_v35, 1 }
 0x440   : > { %v3385_v20 = vpop.f32.mrf.mxu3  ;;  %v1306_v6 = vsel %vm982_vm3, %v3218_v19, %v3835_v31  ;;  %v3840_v43 = vrot.slane %v2937_v50, 2  ;;  %v1504_v10 = vrot.slane %v2943_v53, 5  ;;  %v1458_v42 = vrot.slane %v2943_v53, 3 }
 0x441   : > { %v3401_v44 = vsel %vm988_vm6, %v3035_v13, %v3385_v20  ;;  %v1541_v54 = vrot.slane %v3385_v20, 2  ;;  %v1630_v29 = vrot.slane %v3385_v20, 6  ;;  %v1491_v13 = vsel %vm982_vm3, %v1490_v18, %v1483_v11 }
 0x442   : > { %1336 = vrot.lane.b32.xlu2 %v1334_v12, %s2566_s29  ;;  %v1492_v16 = vsel %vm984_vm4, %v1491_v13, %v1485_v48  ;;  %v1514_v28 = vsel %vm978_vm1, %v3837_v33, %v3836_v7  ;;  %v3839_v11 = vrot.slane %v2855_v61, 5  ;;  %v1283_v19 = vsel %vm982_vm3, %v3224_v60, %v3840_v43 }
 0x443   : > { %v1548_v30 = vsel %vm988_vm6, %v1547_v49, %v1541_v54  ;;  %v1637_v23 = vsel %vm988_vm6, %v1636_v1, %v1630_v29  ;;  %v1307_v46 = vsel %vm984_vm4, %v1306_v6, %v1300_v26  ;;  %v1279_v61 = vrot.slane %v3285_v15, 7 }
 0x444   : > { %1036 = vrot.lane.b32.xlu1 %v1034_v14, %s2565_s13  ;;  %1012 = vrot.lane.b32.xlu0 %v1010_v55, %s2567_s5  ;;  %v1466_v39 = vsel %vm978_vm1, %v3839_v11, %v3838_v2  ;;  %1549 = vst.msk [vmem:[#allocation2 + $0x30] sm:$0x7f] %vm990_vm7, %v1548_v30  ;;  %v1284_v0 = vsel %vm984_vm4, %v1283_v19, %v1277_v34  ;;  %v1599_v56 = vrot.slane %v2931_v47, 2  ;;  %v1393_v50 = vrot.slane %v2941_v52, 7 }
 0x445   : > { %1638 = vst.msk [vmem:[#allocation2 + $0x38] sm:$0x7f] %vm990_vm7, %v1637_v23  ;;  %v1493_v18 = vsel %vm986_vm5, %v1492_v16, %v1487_v36  ;;  %v1506_v60 = vrot.slane %v2941_v52, 4  ;;  %v3841_v51 = vrot.slane %v2859_v63, 1  ;;  %v1395_v3 = vrot.slane %v3017_v38, 6 }
 0x446   : > { %v1494_v17 = vsel %vm988_vm6, %v1493_v18, %v3329_v40  ;;  %v1402_v24 = vsel %vm980_vm2, %v3085_v21, %v2943_v53  ;;  %v1460_v5 = vrot.slane %v2941_v52, 2  ;;  %v1308_v41 = vsel %vm986_vm5, %v1307_v46, %v1302_v25 }
 0x447   : > { %v1563_v62 = vsel %vm978_vm1, %v3841_v51, %v2931_v47  ;;  %v1285_v59 = vsel %vm986_vm5, %v1284_v0, %v3011_v35  ;;  %v1515_v27 = vsel %vm980_vm2, %v1514_v28, %v1504_v10  ;;  %v1467_v4 = vsel %vm980_vm2, %v1466_v39, %v1458_v42 }
 0x448   : > { %v1309_v12 = vsel %vm988_vm6, %v1308_v41, %v3285_v15  ;;  %v1286_v22 = vsel %vm988_vm6, %v1285_v59, %v1279_v61  ;;  %v1508_v21 = vrot.slane %v3017_v38, 3  ;;  %v1462_v48 = vrot.slane %v3017_v38, 1 }
 0x449   : > { %v1397_v26 = vrot.slane %v3015_v37, 5  ;;  %v1403_v35 = vsel %vm982_vm3, %v1402_v24, %v1393_v50  ;;  %v1687_v34 = vrot.slane %v2931_v47, 6  ;;  %v1641_v54 = vrot.slane %v2931_v47, 4 }
 0x44a   : > { %1496 = vrot.lane.b32.xlu2 %v1494_v17, %s2565_s13  ;;  %v1399_v15 = vrot.slane %v3329_v40, 4  ;;  %v1404_v29 = vsel %vm984_vm4, %v1403_v35, %v1395_v3  ;;  %v1601_v14 = vrot.slane %v2956_v9, 1  ;;  %v1368_v55 = vrot.slane %v2943_v53, 7 }
 0x44b   : > { %v1510_v49 = vrot.slane %v3015_v37, 2  ;;  %v1516_v1 = vsel %vm982_vm3, %v1515_v27, %v1506_v60  ;;  %v1468_v36 = vsel %vm982_vm3, %v1467_v4, %v1460_v5  ;;  %v1553_v13 = vrot.slane %v2956_v9, 7 }
 0x44c   : > { %1311 = vrot.lane.b32.xlu1 %v1309_v12, %s2565_s13  ;;  %1288 = vrot.lane.b32.xlu0 %v1286_v22, %s2567_s5  ;;  %v1512_v30 = vrot.slane %v3329_v40, 1  ;;  %v1517_v23 = vsel %vm984_vm4, %v1516_v1, %v1508_v21  ;;  %v1464_v16 = vrot.slane %v3329_v40, 7  ;;  %v1469_v31 = vsel %vm984_vm4, %v1468_v36, %v1462_v48 }
 0x44d   : > { %v1405_v6 = vsel %vm986_vm5, %v1404_v29, %v1397_v26  ;;  %v3842_v53 = vrot.slane %v2859_v63, 3  ;;  %v1370_v33 = vrot.slane %v2941_v52, 6  ;;  %v1576_v28 = vrot.slane %v2931_v47, 1 }
 0x44e   : > { %v1406_v2 = vsel %vm988_vm6, %v1405_v6, %v1399_v15  ;;  %v1603_v11 = vrot.slane %v3026_v57, 7  ;;  %v1379_v25 = vsel %vm980_vm2, %v3089_v32, %v1368_v55  ;;  %v1518_v43 = vsel %vm986_vm5, %v1517_v23, %v1510_v49 }
 0x44f   : > { %v1609_v7 = vsel %vm978_vm1, %v3842_v53, %v1599_v56  ;;  %v1470_v19 = vsel %vm986_vm5, %v1469_v31, %v3015_v37  ;;  %v1555_v52 = vrot.slane %v2954_v8, 6  ;;  %v1564_v47 = vsel %vm980_vm2, %v1563_v62, %v1553_v13 }
 0x450   : > { %v1610_v39 = vsel %vm980_vm2, %v1609_v7, %v1601_v14  ;;  %v1519_v10 = vsel %vm988_vm6, %v1518_v43, %v1512_v30  ;;  %v1471_v42 = vsel %vm988_vm6, %v1470_v19, %v1464_v16  ;;  %v1557_v46 = vrot.slane %v3026_v57, 5 }
 0x451   : > { %v1372_v61 = vrot.slane %v3017_v38, 5  ;;  %v1605_v32 = vrot.slane %v3028_v58, 6  ;;  %v1611_v0 = vsel %vm982_vm3, %v1610_v39, %v2954_v8  ;;  %v3843_v56 = vrot.slane %v2859_v63, 7 }
 0x452   : > { %1408 = vrot.lane.b32.xlu2 %v1406_v2, %s2565_s13  ;;  %v3844_v50 = vrot.slane %v2859_v63, 5  ;;  %v1607_v51 = vrot.slane %v3385_v20, 5  ;;  %v1612_v38 = vsel %vm984_vm4, %v1611_v0, %v1603_v11  ;;  %v1380_v62 = vsel %vm982_vm3, %v1379_v25, %v1370_v33 }
 0x453   : > { %v1699_v18 = vsel %vm978_vm1, %v3843_v56, %v1687_v34  ;;  %v1689_v17 = vrot.slane %v2956_v9, 5  ;;  %v1559_v3 = vrot.slane %v3028_v58, 4  ;;  %v1565_v24 = vsel %vm982_vm3, %v1564_v47, %v1555_v52 }
 0x454   : > { %1521 = vrot.lane.b32.xlu1 %v1519_v10, %s2566_s29  ;;  %1473 = vrot.lane.b32.xlu0 %v1471_v42, %s2567_s5  ;;  %v1651_v60 = vsel %vm978_vm1, %v3844_v50, %v1641_v54  ;;  %v1374_v5 = vrot.slane %v3015_v37, 4  ;;  %v1643_v41 = vrot.slane %v2956_v9, 3  ;;  %v1561_v59 = vrot.slane %v3385_v20, 3 }
 0x455   : > { %v1566_v27 = vsel %vm984_vm4, %v1565_v24, %v1557_v46  ;;  %v1376_v4 = vrot.slane %v3329_v40, 3  ;;  %v1381_v12 = vsel %vm984_vm4, %v1380_v62, %v1372_v61  ;;  %v1613_v22 = vsel %vm986_vm5, %v1612_v38, %v1605_v32  ;;  %v3591_v32 = vld [vmem:[%s3824_s1] sm:$0xff] }
 0x456   : > { %v1691_v21 = vrot.slane %v2954_v8, 4  ;;  %v1645_v48 = vrot.slane %v2954_v8, 2  ;;  %v3845_v26 = vrot.slane %v2859_v63, 2  ;;  %v1614_v35 = vsel %vm988_vm6, %v1613_v22, %v1607_v51  ;;  %v3603_v51 = vld [vmem:[%s3824_s1 + $0x8] sm:$0xff] }
 0x457   : > { %v1693_v34 = vrot.slane %v3026_v57, 3  ;;  %v1700_v54 = vsel %vm980_vm2, %v1699_v18, %v1689_v17  ;;  %v1578_v40 = vrot.slane %v2954_v8, 7  ;;  %v1567_v15 = vsel %vm986_vm5, %v1566_v27, %v1559_v3  ;;  %v3617_v3 = vld [vmem:[%s3824_s1 + $0x10] sm:$0xff]  ;;  %v1713_v27 = vld [vmem:[%s3824_s1 + $0x18] sm:$0xff] }
 0x458   : > { %v1586_v37 = vsel %vm978_vm1, %v3845_v26, %v1576_v28  ;;  %v1382_v29 = vsel %vm986_vm5, %v1381_v12, %v1374_v5  ;;  %v1652_v14 = vsel %vm980_vm2, %v1651_v60, %v1643_v41  ;;  %v1568_v55 = vsel %vm988_vm6, %v1567_v15, %v1561_v59  ;;  %v1716_v15 = vld [vmem:[%s3824_s1 + $0x30] sm:$0xff] }
 0x459   : > { %v1587_v63 = vsel %vm980_vm2, %v1586_v37, %v2956_v9  ;;  %v1383_v49 = vsel %vm988_vm6, %v1382_v29, %v1376_v4  ;;  %v1647_v1 = vrot.slane %v3026_v57, 1  ;;  %v1580_v36 = vrot.slane %v3026_v57, 6  ;;  %v1717_v29 = vld [vmem:[%s3824_s1 + $0x38] sm:$0xff] }
 0x45a   : > { %1616 = vrot.lane.b32.xlu2 %v1614_v35, %s2566_s29  ;;  %v1695_v8 = vrot.slane %v3028_v58, 2  ;;  %v1701_v13 = vsel %vm982_vm3, %v1700_v54, %v1691_v21  ;;  %v1697_v30 = vrot.slane %v3385_v20, 1  ;;  %v1653_v23 = vsel %vm982_vm3, %v1652_v14, %v1645_v48  ;;  %v1714_v21 = vld [vmem:[%s3824_s1 + $0x20] sm:$0xff] }
 0x45b   : > { %v1702_v9 = vsel %vm984_vm4, %v1701_v13, %v1693_v34  ;;  %v1582_v16 = vrot.slane %v3028_v58, 5  ;;  %v1588_v31 = vsel %vm982_vm3, %v1587_v63, %v1578_v40  ;;  %v1649_v57 = vrot.slane %v3385_v20, 7  ;;  %v1715_v34 = vld [vmem:[%s3824_s1 + $0x28] sm:$0xff] }
 0x45c   : > { %1570 = vrot.lane.b32.xlu1 %v1568_v55, %s2567_s5  ;;  %1385 = vrot.lane.b32.xlu0 %v1383_v49, %s2567_s5  ;;  %v1654_v6 = vsel %vm984_vm4, %v1653_v23, %v1647_v1  ;;  %v1584_v53 = vrot.slane %v3385_v20, 4  ;;  %v1589_v7 = vsel %vm984_vm4, %v1588_v31, %v1580_v36  ;;  %v1703_v33 = vsel %vm986_vm5, %v1702_v9, %v1695_v8 }
 0x45d   : > { %v1704_v28 = vsel %vm988_vm6, %v1703_v33, %v1697_v30  ;;  %v1655_v2 = vsel %vm986_vm5, %v1654_v6, %v3028_v58  ;;  %v1590_v11 = vsel %vm986_vm5, %v1589_v7, %v1582_v16  ;;  %v2568_v43 = vmov 1.0  }
 0x45e   : > { %v1656_v39 = vsel %vm988_vm6, %v1655_v2, %v1649_v57  ;;  %v1591_v25 = vsel %vm988_vm6, %v1590_v11, %v1584_v53  ;;  %958 = vst [vmem:[#allocation2 + $0x7] ss:$8 sm:$0xf] %v2568_v43 }
 0x45f   : > { %959 = vst [vmem:[#allocation2 + $0x7] ss:$8 sm:$0xf0] %v2568_v43 }
 0x462   : > { %1706 = vrot.lane.b32.xlu2 %v1704_v28, %s2566_s29 }
 0x464   : > { %1658 = vrot.lane.b32.xlu1 %v1656_v39, %s2567_s5  ;;  %1593 = vrot.lane.b32.xlu0 %v1591_v25, %s2565_s13 }
 0x46c   : > { %1431 = vrot.lane.b32.xlu1 %v3355_v45, %s2566_s29  ;;  %1681 = vrot.lane.b32.xlu0 %v3401_v44, %s2565_s13  ;;  %s2515_s29 = scalar_lea.hbm %s3827_s4, 1024 }
 0x46d   : > { %p2517_p4 = scmp.lt.s32.totalorder %s2515_s29, %s2511_s25 }
 0x46f   : > { %p2518_p5 = por %p2517_p4, %p2516_p3 }
 0x471   : > { %p2519_p7 = pnand %p2518_p5, %p2514_p2 }
 0x484   : > { %v1127_v20 = vpop.permute.xlu2 %1126 }
 0x48c   : > { %v1152_v58 = vpop.permute.xlu2 %1151 }
 0x494   : > { %v1061_v47 = vpop.permute.xlu2 %1060 }
 0x49c   : > { %v1337_v46 = vpop.permute.xlu2 %1336 }
 0x4a4   : > { %v1497_v60 = vpop.permute.xlu2 %1496 }
 0x4a6   : > { %v1247_v19 = vpop.permute.xlu1 %1246  ;;  %v1201_v52 = vpop.permute.xlu0 %1200 }
 0x4a7   : > { %1203 = vst.msk [vmem:[#allocation2 + $0x10] sm:$0x7f] %vm1015_vm8, %v1201_v52 }
 0x4ac   : > { %v1409_v24 = vpop.permute.xlu2 %1408 }
 0x4ae   : > { %v1104_v10 = vpop.permute.xlu1 %1103  ;;  %v1224_v42 = vpop.permute.xlu0 %1223 }
 0x4af   : > { %1106 = vst.msk [vmem:[#allocation2 + $0x8] sm:$0x7f] %vm1015_vm8, %v1104_v10 }
 0x4b0   : > { %1129 = vst.msk [vmem:[#allocation2 + $0x8] sm:$0x7f] %vm1039_vm9, %v1127_v20 }
 0x4b1   : > { %1154 = vst.msk [vmem:[#allocation2 + $0x8] sm:$0x7f] %vm1063_vm10, %v1152_v58 }
 0x4b2   : > { %1226 = vst.msk [vmem:[#allocation2 + $0x10] sm:$0x7f] %vm1039_vm9, %v1224_v42 }
 0x4b3   : > { %1249 = vst.msk [vmem:[#allocation2 + $0x10] sm:$0x7f] %vm1063_vm10, %v1247_v19 }
 0x4b4   : > { %v1617_v4 = vpop.permute.xlu2 %1616 }
 0x4b6   : > { %v1037_v45 = vpop.permute.xlu1 %1036  ;;  %v1013_v44 = vpop.permute.xlu0 %1012 }
 0x4b7   : > { %1016 = vst.msk [vmem:[#allocation2] sm:$0x7f] %vm1015_vm8, %v1013_v44 }
 0x4b8   : > { %1040 = vst.msk [vmem:[#allocation2] sm:$0x7f] %vm1039_vm9, %v1037_v45  ;;  %v1719_v61 = vld [vmem:[#allocation2 + $0x8] sm:$0xff] }
 0x4b9   : > { %1064 = vst.msk [vmem:[#allocation2] sm:$0x7f] %vm1063_vm10, %v1061_v47  ;;  %1807 = vmatpush.msra.mxu2 %v1719_v61 }
 0x4ba   : > { %v1720_v0 = vld [vmem:[#allocation2 + $0x10] sm:$0xff]  ;;  %2330 = vmatmul.msk.f32.vlgmr.msra.gmra.mxu2 %vm1726_vm11, %v3591_v32 }
 0x4bb   : > { %1848 = vmatpush.msra.mxu3 %v1720_v0 }
 0x4bc   : > { %2338 = vmatmul.msk.f32.vlgmr.msra.gmra.mxu3 %vm1726_vm11, %v3591_v32  ;;  %v1707_v37 = vpop.permute.xlu2 %1706 }
 0x4be   : > { %v1312_v56 = vpop.permute.xlu1 %1311  ;;  %v1289_v18 = vpop.permute.xlu0 %1288 }
 0x4bf   : > { %1291 = vst.msk [vmem:[#allocation2 + $0x18] sm:$0x7f] %vm1015_vm8, %v1289_v18 }
 0x4c0   : > { %1314 = vst.msk [vmem:[#allocation2 + $0x18] sm:$0x7f] %vm1039_vm9, %v1312_v56  ;;  %v1718_v50 = vld [vmem:[#allocation2] sm:$0xff] }
 0x4c1   : > { %1339 = vst.msk [vmem:[#allocation2 + $0x18] sm:$0x7f] %vm1063_vm10, %v1337_v46  ;;  %1766 = vmatpush.msra.mxu0 %v1718_v50 }
 0x4c2   : > { %2322 = vmatmul.msk.f32.vlgmr.msra.gmra.mxu0 %vm1726_vm11, %v3591_v32  ;;  %2331 = vmatmul.msk.f32.gmra.mxu2 %vm1726_vm11, %v3603_v51 }
 0x4c4   : > { %2339 = vmatmul.msk.f32.gmra.mxu3 %vm1726_vm11, %v3603_v51 }
 0x4c6   : > { %v1522_v38 = vpop.permute.xlu1 %1521  ;;  %v1474_v62 = vpop.permute.xlu0 %1473 }
 0x4c7   : > { %1476 = vst.msk [vmem:[#allocation2 + $0x28] sm:$0x7f] %vm1015_vm8, %v1474_v62 }
 0x4c8   : > { %1499 = vst.msk [vmem:[#allocation2 + $0x28] sm:$0x7f] %vm1039_vm9, %v1497_v60  ;;  %v1721_v17 = vld [vmem:[#allocation2 + $0x18] sm:$0xff] }
 0x4c9   : > { %1524 = vst.msk [vmem:[#allocation2 + $0x28] sm:$0x7f] %vm1063_vm10, %v1522_v38  ;;  %1889 = vmatpush.msra.mxu1 %v1721_v17  ;;  %2408 = vmatpush.msrb.mxu3 %v1721_v17 }
 0x4ca   : > { %2323 = vmatmul.msk.f32.gmra.mxu0 %vm1726_vm11, %v3603_v51  ;;  %2346 = vmatmul.msk.f32.vlgmr.msra.gmra.mxu1 %vm1726_vm11, %v3591_v32 }
 0x4cb   : > { %2332 = vmatmul.msk.f32.gmra.mxu2 %vm1726_vm11, %v3617_v3 }
 0x4cc   : > { %2340 = vmatmul.msk.f32.gmra.mxu3 %vm1726_vm11, %v3617_v3 }
 0x4ce   : > { %v1571_v5 = vpop.permute.xlu1 %1570  ;;  %v1386_v41 = vpop.permute.xlu0 %1385 }
 0x4cf   : > { %1573 = vst.msk [vmem:[#allocation2 + $0x30] sm:$0x7f] %vm1015_vm8, %v1571_v5 }
 0x4d0   : > { %1388 = vst.msk [vmem:[#allocation2 + $0x20] sm:$0x7f] %vm1015_vm8, %v1386_v41  ;;  %v1723_v59 = vld [vmem:[#allocation2 + $0x28] sm:$0xff] }
 0x4d1   : > { %1411 = vst.msk [vmem:[#allocation2 + $0x20] sm:$0x7f] %vm1039_vm9, %v1409_v24  ;;  %1971 = vmatpush.msrb.mxu2 %v1723_v59 }
 0x4d2   : > { %2324 = vmatmul.msk.f32.gmra.mxu0 %vm1726_vm11, %v3617_v3  ;;  %2347 = vmatmul.msk.f32.gmra.mxu1 %vm1726_vm11, %v3603_v51 }
 0x4d3   : > { %2333 = vmatmul.msk.f32.gmra.mxu2 %vm1726_vm11, %v1713_v27 }
 0x4d4   : > { %2341 = vmatmul.msk.f32.gmra.mxu3 %vm1726_vm11, %v1713_v27 }
 0x4d6   : > { %v1659_v12 = vpop.permute.xlu1 %1658  ;;  %v1594_v22 = vpop.permute.xlu0 %1593 }
 0x4d7   : > { %1661 = vst.msk [vmem:[#allocation2 + $0x38] sm:$0x7f] %vm1015_vm8, %v1659_v12 }
 0x4d8   : > { %1596 = vst.msk [vmem:[#allocation2 + $0x30] sm:$0x7f] %vm1039_vm9, %v1594_v22 }
 0x4d9   : > { %1619 = vst.msk [vmem:[#allocation2 + $0x30] sm:$0x7f] %vm1063_vm10, %v1617_v4 }
 0x4da   : > { %2325 = vmatmul.msk.f32.gmra.mxu0 %vm1726_vm11, %v1713_v27  ;;  %2348 = vmatmul.msk.f32.gmra.mxu1 %vm1726_vm11, %v3617_v3 }
 0x4db   : > { %2334 = vmatmul.msk.f32.gmra.mxu2 %vm1726_vm11, %v1714_v21 }
 0x4dc   : > { %2342 = vmatmul.msk.f32.gmra.mxu3 %vm1726_vm11, %v1714_v21 }
 0x4de   : > { %v1432_v48 = vpop.permute.xlu1 %1431  ;;  %v1682_v26 = vpop.permute.xlu0 %1681 }
 0x4df   : > { %1434 = vst.msk [vmem:[#allocation2 + $0x20] sm:$0x7f] %vm1063_vm10, %v1432_v48 }
 0x4e0   : > { %1684 = vst.msk [vmem:[#allocation2 + $0x38] sm:$0x7f] %vm1039_vm9, %v1682_v26  ;;  %v1724_v35 = vld [vmem:[#allocation2 + $0x30] sm:$0xff] }
 0x4e1   : > { %1709 = vst.msk [vmem:[#allocation2 + $0x38] sm:$0x7f] %vm1063_vm10, %v1707_v37  ;;  %2012 = vmatpush.msra.mxu3 %v1724_v35 }
 0x4e2   : > { %2326 = vmatmul.msk.f32.gmra.mxu0 %vm1726_vm11, %v1714_v21  ;;  %2349 = vmatmul.msk.f32.gmra.mxu1 %vm1726_vm11, %v1713_v27 }
 0x4e3   : > { %2335 = vmatmul.msk.f32.gmra.mxu2 %vm1726_vm11, %v1715_v34 }
 0x4e4   : > { %2343 = vmatmul.msk.f32.gmra.mxu3 %vm1726_vm11, %v1715_v34 }
 0x4e6   : > { %v1722_v54 = vld [vmem:[#allocation2 + $0x20] sm:$0xff] }
 0x4e7   : > { %1930 = vmatpush.msrb.mxu0 %v1722_v54 }
 0x4e8   : > { %v1725_v40 = vld [vmem:[#allocation2 + $0x38] sm:$0xff] }
 0x4e9   : > { %2053 = vmatpush.msrb.mxu1 %v1725_v40 }
 0x4ea   : > { %2327 = vmatmul.msk.f32.gmra.mxu0 %vm1726_vm11, %v1715_v34  ;;  %2350 = vmatmul.msk.f32.gmra.mxu1 %vm1726_vm11, %v1714_v21 }
 0x4eb   : > { %2336 = vmatmul.msk.f32.gmra.mxu2 %vm1726_vm11, %v1716_v15 }
 0x4ec   : > { %2344 = vmatmul.msk.f32.gmra.mxu3 %vm1726_vm11, %v1716_v15 }
 0x4f2   : > { %2328 = vmatmul.msk.f32.gmra.mxu0 %vm1726_vm11, %v1716_v15  ;;  %2351 = vmatmul.msk.f32.gmra.mxu1 %vm1726_vm11, %v1715_v34 }
 0x4f3   : > { %2337 = vmatmul.msk.f32.gmra.mxu2 %vm1726_vm11, %v1717_v29 }
 0x4f4   : > { %2345 = vmatmul.msk.f32.gmra.mxu3 %vm1726_vm11, %v1717_v29 }
 0x4fa   : > { %2329 = vmatmul.msk.f32.gmra.mxu0 %vm1726_vm11, %v1717_v29  ;;  %2352 = vmatmul.msk.f32.gmra.mxu1 %vm1726_vm11, %v1716_v15 }
 0x4fb   : > { %2362 = vmatmul.msk.f32.vlgmr.msrb.gmra.mxu2 %vm1726_vm11, %v3591_v32 }
 0x4fc   : > { %2353 = vmatmul.msk.f32.vlgmr.msrb.gmra.mxu3 %vm1726_vm11, %v1717_v29 }
 0x502   : > { %2354 = vmatmul.msk.f32.vlgmr.msrb.gmra.mxu0 %vm1726_vm11, %v3591_v32  ;;  %2378 = vmatmul.msk.f32.vlgmr.msrb.gmra.mxu1 %vm1726_vm11, %v3591_v32 }
 0x503   : > { %2363 = vmatmul.msk.f32.gmra.mxu2 %vm1726_vm11, %v3603_v51 }
 0x504   : > { %2370 = vmatmul.msk.f32.vlgmr.msra.gmra.mxu3 %vm1726_vm11, %v3591_v32 }
 0x50a   : > { %2355 = vmatmul.msk.f32.gmra.mxu0 %vm1726_vm11, %v3603_v51  ;;  %2379 = vmatmul.msk.f32.gmra.mxu1 %vm1726_vm11, %v3603_v51 }
 0x50b   : > { %2364 = vmatmul.msk.f32.gmra.mxu2 %vm1726_vm11, %v3617_v3 }
 0x50c   : > { %2371 = vmatmul.msk.f32.gmra.mxu3 %vm1726_vm11, %v3603_v51 }
 0x512   : > { %2356 = vmatmul.msk.f32.gmra.mxu0 %vm1726_vm11, %v3617_v3  ;;  %2380 = vmatmul.msk.f32.gmra.mxu1 %vm1726_vm11, %v3617_v3 }
 0x513   : > { %2365 = vmatmul.msk.f32.gmra.mxu2 %vm1726_vm11, %v1713_v27 }
 0x514   : > { %2372 = vmatmul.msk.f32.gmra.mxu3 %vm1726_vm11, %v3617_v3 }
 0x51a   : > { %2357 = vmatmul.msk.f32.gmra.mxu0 %vm1726_vm11, %v1713_v27  ;;  %2381 = vmatmul.msk.f32.gmra.mxu1 %vm1726_vm11, %v1713_v27 }
 0x51b   : > { %2366 = vmatmul.msk.f32.gmra.mxu2 %vm1726_vm11, %v1714_v21 }
 0x51c   : > { %2373 = vmatmul.msk.f32.gmra.mxu3 %vm1726_vm11, %v1713_v27 }
 0x522   : > { %2358 = vmatmul.msk.f32.gmra.mxu0 %vm1726_vm11, %v1714_v21  ;;  %2382 = vmatmul.msk.f32.gmra.mxu1 %vm1726_vm11, %v1714_v21 }
 0x523   : > { %2367 = vmatmul.msk.f32.gmra.mxu2 %vm1726_vm11, %v1715_v34 }
 0x524   : > { %2374 = vmatmul.msk.f32.gmra.mxu3 %vm1726_vm11, %v1714_v21 }
 0x52a   : > { %2359 = vmatmul.msk.f32.gmra.mxu0 %vm1726_vm11, %v1715_v34  ;;  %2383 = vmatmul.msk.f32.gmra.mxu1 %vm1726_vm11, %v1715_v34 }
 0x52b   : > { %2368 = vmatmul.msk.f32.gmra.mxu2 %vm1726_vm11, %v1716_v15 }
 0x52c   : > { %2375 = vmatmul.msk.f32.gmra.mxu3 %vm1726_vm11, %v1715_v34 }
 0x532   : > { %2360 = vmatmul.msk.f32.gmra.mxu0 %vm1726_vm11, %v1716_v15  ;;  %2384 = vmatmul.msk.f32.gmra.mxu1 %vm1726_vm11, %v1716_v15 }
 0x533   : > { %2369 = vmatmul.msk.f32.gmra.mxu2 %vm1726_vm11, %v1717_v29 }
 0x534   : > { %2376 = vmatmul.msk.f32.gmra.mxu3 %vm1726_vm11, %v1716_v15 }
 0x53a   : > { %2361 = vmatmul.msk.f32.gmra.mxu0 %vm1726_vm11, %v1717_v29  ;;  %2385 = vmatmul.msk.f32.gmra.mxu1 %vm1726_vm11, %v1717_v29 }
 0x53c   : > { %2377 = vmatmul.msk.f32.gmra.mxu3 %vm1726_vm11, %v1717_v29 }
 0x53d   : > { %v1809_v14 = vpop.f32.mrf.mxu2 }
 0x53e   : > { %2080 = vst [vmem:[%s3722_s7 + $0x8] sm:$0xff] %v1809_v14 }
 0x53f   : > { %v1850_v63 = vpop.f32.mrf.mxu3  ;;  %v1768_v55 = vpop.f32.mrf.mxu0 }
 0x540   : > { %2081 = vst [vmem:[%s3722_s7 + $0x10] sm:$0xff] %v1850_v63 }
 0x541   : > { %2079 = vst [vmem:[%s3722_s7] sm:$0xff] %v1768_v55 }
 0x545   : > { %v1812_v49 = vpop.f32.mrf.mxu2 }
 0x546   : > { %2088 = vst [vmem:[%s3722_s7 + $0x48] sm:$0xff] %v1812_v49 }
 0x547   : > { %v1853_v1 = vpop.f32.mrf.mxu3  ;;  %v1771_v36 = vpop.f32.mrf.mxu0 }
 0x548   : > { %2089 = vst [vmem:[%s3722_s7 + $0x50] sm:$0xff] %v1853_v1  ;;  %v1891_v8 = vpop.f32.mrf.mxu1 }
 0x549   : > { %2087 = vst [vmem:[%s3722_s7 + $0x40] sm:$0xff] %v1771_v36 }
 0x54a   : > { %2082 = vst [vmem:[%s3722_s7 + $0x18] sm:$0xff] %v1891_v8 }
 0x54e   : > { %v1815_v13 = vpop.f32.mrf.mxu2 }
 0x54f   : > { %v1856_v30 = vpop.f32.mrf.mxu3  ;;  %v1774_v9 = vpop.f32.mrf.mxu0  ;;  %2096 = vst [vmem:[%s3722_s7 + $0x88] sm:$0xff] %v1815_v13 }
 0x550   : > { %2097 = vst [vmem:[%s3722_s7 + $0x90] sm:$0xff] %v1856_v30  ;;  %v1894_v23 = vpop.f32.mrf.mxu1 }
 0x551   : > { %2095 = vst [vmem:[%s3722_s7 + $0x80] sm:$0xff] %v1774_v9 }
 0x552   : > { %2090 = vst [vmem:[%s3722_s7 + $0x58] sm:$0xff] %v1894_v23 }
 0x556   : > { %v1818_v16 = vpop.f32.mrf.mxu2 }
 0x557   : > { %v1859_v31 = vpop.f32.mrf.mxu3  ;;  %v1777_v57 = vpop.f32.mrf.mxu0  ;;  %2104 = vst [vmem:[%s3722_s7 + $0xc8] sm:$0xff] %v1818_v16 }
 0x558   : > { %2105 = vst [vmem:[%s3722_s7 + $0xd0] sm:$0xff] %v1859_v31  ;;  %v1897_v6 = vpop.f32.mrf.mxu1 }
 0x559   : > { %2103 = vst [vmem:[%s3722_s7 + $0xc0] sm:$0xff] %v1777_v57 }
 0x55a   : > { %2098 = vst [vmem:[%s3722_s7 + $0x98] sm:$0xff] %v1897_v6 }
 0x55e   : > { %v1821_v53 = vpop.f32.mrf.mxu2 }
 0x55f   : > { %v1862_v7 = vpop.f32.mrf.mxu3  ;;  %v1780_v33 = vpop.f32.mrf.mxu0  ;;  %2112 = vst [vmem:[%s3722_s7 + $0x108] sm:$0xff] %v1821_v53 }
 0x560   : > { %2113 = vst [vmem:[%s3722_s7 + $0x110] sm:$0xff] %v1862_v7  ;;  %v1900_v28 = vpop.f32.mrf.mxu1 }
 0x561   : > { %2111 = vst [vmem:[%s3722_s7 + $0x100] sm:$0xff] %v1780_v33 }
 0x562   : > { %2106 = vst [vmem:[%s3722_s7 + $0xd8] sm:$0xff] %v1900_v28 }
 0x566   : > { %v1824_v2 = vpop.f32.mrf.mxu2 }
 0x567   : > { %v1865_v11 = vpop.f32.mrf.mxu3  ;;  %v1783_v39 = vpop.f32.mrf.mxu0  ;;  %2120 = vst [vmem:[%s3722_s7 + $0x148] sm:$0xff] %v1824_v2 }
 0x568   : > { %2121 = vst [vmem:[%s3722_s7 + $0x150] sm:$0xff] %v1865_v11  ;;  %v1903_v25 = vpop.f32.mrf.mxu1 }
 0x569   : > { %2119 = vst [vmem:[%s3722_s7 + $0x140] sm:$0xff] %v1783_v39 }
 0x56a   : > { %2114 = vst [vmem:[%s3722_s7 + $0x118] sm:$0xff] %v1903_v25 }
 0x56e   : > { %v1827_v20 = vpop.f32.mrf.mxu2 }
 0x56f   : > { %v1868_v43 = vpop.f32.mrf.mxu3  ;;  %v1786_v58 = vpop.f32.mrf.mxu0  ;;  %2128 = vst [vmem:[%s3722_s7 + $0x188] sm:$0xff] %v1827_v20 }
 0x570   : > { %2129 = vst [vmem:[%s3722_s7 + $0x190] sm:$0xff] %v1868_v43  ;;  %v1906_v19 = vpop.f32.mrf.mxu1 }
 0x571   : > { %2127 = vst [vmem:[%s3722_s7 + $0x180] sm:$0xff] %v1786_v58 }
 0x572   : > { %2122 = vst [vmem:[%s3722_s7 + $0x158] sm:$0xff] %v1906_v19 }
 0x576   : > { %v1830_v52 = vpop.f32.mrf.mxu2 }
 0x577   : > { %v1871_v47 = vpop.f32.mrf.mxu3  ;;  %v1789_v10 = vpop.f32.mrf.mxu0  ;;  %2136 = vst [vmem:[%s3722_s7 + $0x1c8] sm:$0xff] %v1830_v52 }
 0x578   : > { %2137 = vst [vmem:[%s3722_s7 + $0x1d0] sm:$0xff] %v1871_v47  ;;  %v1909_v42 = vpop.f32.mrf.mxu1 }
 0x579   : > { %2135 = vst [vmem:[%s3722_s7 + $0x1c0] sm:$0xff] %v1789_v10 }
 0x57a   : > { %2130 = vst [vmem:[%s3722_s7 + $0x198] sm:$0xff] %v1909_v42 }
 0x57e   : > { %v1973_v45 = vpop.f32.mrf.mxu2 }
 0x57f   : > { %v1912_v44 = vpop.f32.mrf.mxu3  ;;  %v1932_v46 = vpop.f32.mrf.mxu0  ;;  %2084 = vst [vmem:[%s3722_s7 + $0x28] sm:$0xff] %v1973_v45 }
 0x580   : > { %2138 = vst [vmem:[%s3722_s7 + $0x1d8] sm:$0xff] %v1912_v44  ;;  %v2055_v61 = vpop.f32.mrf.mxu1 }
 0x581   : > { %2083 = vst [vmem:[%s3722_s7 + $0x20] sm:$0xff] %v1932_v46 }
 0x582   : > { %2086 = vst [vmem:[%s3722_s7 + $0x38] sm:$0xff] %v2055_v61 }
 0x586   : > { %v1976_v32 = vpop.f32.mrf.mxu2 }
 0x587   : > { %v2014_v0 = vpop.f32.mrf.mxu3  ;;  %v1935_v56 = vpop.f32.mrf.mxu0  ;;  %2092 = vst [vmem:[%s3722_s7 + $0x68] sm:$0xff] %v1976_v32 }
 0x588   : > { %2085 = vst [vmem:[%s3722_s7 + $0x30] sm:$0xff] %v2014_v0  ;;  %v2058_v18 = vpop.f32.mrf.mxu1 }
 0x589   : > { %2091 = vst [vmem:[%s3722_s7 + $0x60] sm:$0xff] %v1935_v56 }
 0x58a   : > { %2094 = vst [vmem:[%s3722_s7 + $0x78] sm:$0xff] %v2058_v18 }
 0x58e   : > { %v1979_v50 = vpop.f32.mrf.mxu2 }
 0x58f   : > { %v2017_v60 = vpop.f32.mrf.mxu3  ;;  %v1938_v51 = vpop.f32.mrf.mxu0  ;;  %2100 = vst [vmem:[%s3722_s7 + $0xa8] sm:$0xff] %v1979_v50 }
 0x590   : > { %2093 = vst [vmem:[%s3722_s7 + $0x70] sm:$0xff] %v2017_v60  ;;  %v2061_v38 = vpop.f32.mrf.mxu1 }
 0x591   : > { %2099 = vst [vmem:[%s3722_s7 + $0xa0] sm:$0xff] %v1938_v51 }
 0x592   : > { %2102 = vst [vmem:[%s3722_s7 + $0xb8] sm:$0xff] %v2061_v38 }
 0x596   : > { %v1982_v62 = vpop.f32.mrf.mxu2 }
 0x597   : > { %v2020_v17 = vpop.f32.mrf.mxu3  ;;  %v1941_v3 = vpop.f32.mrf.mxu0  ;;  %2108 = vst [vmem:[%s3722_s7 + $0xe8] sm:$0xff] %v1982_v62 }
 0x598   : > { %2101 = vst [vmem:[%s3722_s7 + $0xb0] sm:$0xff] %v2020_v17  ;;  %v2064_v24 = vpop.f32.mrf.mxu1 }
 0x599   : > { %2107 = vst [vmem:[%s3722_s7 + $0xe0] sm:$0xff] %v1941_v3 }
 0x59a   : > { %2110 = vst [vmem:[%s3722_s7 + $0xf8] sm:$0xff] %v2064_v24 }
 0x59e   : > { %v1985_v5 = vpop.f32.mrf.mxu2 }
 0x59f   : > { %v2023_v41 = vpop.f32.mrf.mxu3  ;;  %v1944_v59 = vpop.f32.mrf.mxu0  ;;  %2116 = vst [vmem:[%s3722_s7 + $0x128] sm:$0xff] %v1985_v5 }
 0x5a0   : > { %2109 = vst [vmem:[%s3722_s7 + $0xf0] sm:$0xff] %v2023_v41  ;;  %v2067_v27 = vpop.f32.mrf.mxu1 }
 0x5a1   : > { %2115 = vst [vmem:[%s3722_s7 + $0x120] sm:$0xff] %v1944_v59 }
 0x5a2   : > { %2118 = vst [vmem:[%s3722_s7 + $0x138] sm:$0xff] %v2067_v27 }
 0x5a6   : > { %v1988_v4 = vpop.f32.mrf.mxu2 }
 0x5a7   : > { %v2026_v12 = vpop.f32.mrf.mxu3  ;;  %v1947_v22 = vpop.f32.mrf.mxu0  ;;  %2124 = vst [vmem:[%s3722_s7 + $0x168] sm:$0xff] %v1988_v4 }
 0x5a8   : > { %2117 = vst [vmem:[%s3722_s7 + $0x130] sm:$0xff] %v2026_v12  ;;  %v2070_v21 = vpop.f32.mrf.mxu1 }
 0x5a9   : > { %2123 = vst [vmem:[%s3722_s7 + $0x160] sm:$0xff] %v1947_v22 }
 0x5aa   : > { %2126 = vst [vmem:[%s3722_s7 + $0x178] sm:$0xff] %v2070_v21 }
 0x5ae   : > { %v1991_v48 = vpop.f32.mrf.mxu2 }
 0x5af   : > { %v2029_v26 = vpop.f32.mrf.mxu3  ;;  %v1950_v37 = vpop.f32.mrf.mxu0  ;;  %2132 = vst [vmem:[%s3722_s7 + $0x1a8] sm:$0xff] %v1991_v48 }
 0x5b0   : > { %2125 = vst [vmem:[%s3722_s7 + $0x170] sm:$0xff] %v2029_v26  ;;  %v2073_v35 = vpop.f32.mrf.mxu1 }
 0x5b1   : > { %2131 = vst [vmem:[%s3722_s7 + $0x1a0] sm:$0xff] %v1950_v37 }
 0x5b2   : > { %2134 = vst [vmem:[%s3722_s7 + $0x1b8] sm:$0xff] %v2073_v35 }
 0x5b6   : > { %v1994_v34 = vpop.f32.mrf.mxu2 }
 0x5b7   : > { %v2032_v54 = vpop.f32.mrf.mxu3  ;;  %v1953_v40 = vpop.f32.mrf.mxu0  ;;  %2140 = vst [vmem:[%s3722_s7 + $0x1e8] sm:$0xff] %v1994_v34 }
 0x5b8   : > { %2133 = vst [vmem:[%s3722_s7 + $0x1b0] sm:$0xff] %v2032_v54  ;;  %v2076_v15 = vpop.f32.mrf.mxu1 }
 0x5b9   : > { %2139 = vst [vmem:[%s3722_s7 + $0x1e0] sm:$0xff] %v1953_v40 }
 0x5ba   : > { %2142 = vst [vmem:[%s3722_s7 + $0x1f8] sm:$0xff] %v2076_v15 }
 0x5bf   : > { %v2035_v29 = vpop.f32.mrf.mxu3 }
 0x5c0   : > { %2141 = vst [vmem:[%s3722_s7 + $0x1f0] sm:$0xff] %v2035_v29 }
 0x5c1   : > { %2522 = shalt.err (!%p2519_p7)
}
 0x5c2   : > { %s2569_s6 = smov 1024  }
 0x5c3   : > { %2414 = dma.vmem_to_hbm [thread:$0]  (%p2641_p11), %s2157_s12, 8192, %s2159_s14, %s2144_s19, %s2569_s6, %s2569_s6, %s2565_s13  }
 0x5c4 PF: > { %s2173_s30 = sand.u32 1, %s2549_s15   ;;  %p2421_p8 = pnand %p2234_p9, %p2645_p12 }
 0x5c5   : > { %s2174_s7 = scalar_lea.sflag [#allocation5], %s2173_s30 }
 0x5c6   : > { %p2422_p10 = pneg %p2421_p8 }
 0x5c8   : > { %2544 = dma.done.wait (%p2422_p10), %s2174_s7, 8192  }
 0x5c9   : > { %2546 = vsyncadd (%p2422_p10), %s2174_s7, 4294959104  ;;  %p17_p0 = scmp.ge.s32.totalorder %s2620_s21, 4   ;;  %s3846_s15 = smov %s2553_s16 }
 0x5ca   : > { %s3847_s16 = smov %s2557_s17  ;;  %s3848_s17 = smov %s2632_s24 }
 0x5cb   : > { %s3849_s18 = smov %s2620_s21  ;;  %19 = sbr.rel (!%p17_p0) target bundleno = 5 (0x5), region = 82 }
 0x5d0   :  { %2180 = vsyncpa [#allocation4], 1 }
 0x5d1   :  { %2182 = vsyncpa [#allocation4 + $0x1], 1 }
 0x5d2   :  { %2183 = vsyncpa [#allocation5], 1 }
 0x5d3   :  { %2185 = vsyncpa [#allocation5 + $0x1], 1 }

</bundles_post_ra>
